<compile_context>
chip_gen: v7x
topology: tpu7x:2x2x1
jax: 0.10.0
libtpu: 0.0.40
codegen_flags: <defaults>
</compile_context>

<pallas_src>
import jax
import jax.numpy as jnp
import numpy as np
from jax.experimental import pallas as pl
from jax.experimental.pallas import tpu as pltpu

K = 3                      # params.kernel
LOG_SCALE_FACTOR = 3.0     # params.zero_logscale_factor (use_logscale=True)


def _make_coupling_kernel(H, W, C2, Cout, k, HW, TB):
    """Batched kernel: zero-conv (roll + broadcast FMA) + affine coupling."""
    pad = (k - 1) // 2

    def kernel(x_ref, w_ref, b_ref, m_ref, o_ref, sum_ref):
        # x_ref block: (C, TB, HW) -- channel-major, batch on sublanes,
        # flattened spatial (H*W) on lanes.
        x = x_ref[...].astype(jnp.float32)            # (C, TB, HW)
        z2 = x[C2:]                                   # (C2, TB, HW)
        w = w_ref[...]                                # (Cout, k*k*C2) in vregs
        b = b_ref[...]                                # (Cout, 1)
        m = m_ref[...]                                # (k*k, HW) 0/1 masks

        # Single accumulator; one broadcast FMA per (tap, ci) over the whole
        # (Cout, TB, HW) slab (no per-output-channel loop).
        acc = jnp.zeros((Cout, TB, HW), jnp.float32)
        for kh in range(k):
            dh = kh - pad
            for kw in range(k):
                dw = kw - pad
                tap = kh * k + kw
                offset = dh * W + dw
                mask = m[tap:tap + 1, :]              # (1, HW), 0/1
                for ci in range(C2):
                    z1c = x[ci]                       # (TB, HW)
                    if offset != 0:
                        # XLU lane rotation; 'same'-padding edges (including
                        # wrap-around) are re-zeroed by the static mask.
                        z1c = pltpu.roll(z1c, shift=(-offset) % HW, axis=1)
                    if not (dh == 0 and dw == 0):     # centre tap: mask == 1
                        z1c = z1c * mask
                    col = tap * C2 + ci
                    w_col = w[:, col:col + 1][:, :, None]     # (Cout, 1, 1)
                    acc = acc + z1c[None, :, :] * w_col       # (Cout, TB, HW)

        b3 = b[:, :, None]                            # (Cout, 1, 1)
        s = jnp.tanh(acc[:C2] + b3[:C2])              # (C2, TB, HW)  (EUP)
        t = acc[C2:] + b3[C2:]                        # (C2, TB, HW)
        z2_new = (z2 + t) * jnp.exp(s)

        # Only the z2 half is stored; z1 passes through the aliased buffer.
        o_ref[...] = z2_new.astype(o_ref.dtype)
        # Per-sample logdet term: sum over channels (cheap vreg adds) then a
        # single lane reduction into a (TB, 1) row block.
        sum_ref[...] = jnp.sum(jnp.sum(s, axis=0), axis=-1, keepdims=True)

    return kernel


def _residual_forward_impl(x_nchw, logdet, w_hwio, b, logs, *, k=K,
                           log_scale_factor=LOG_SCALE_FACTOR):
    """Residual.forward(x, logdet, cond=None, reverse=False) via Pallas."""
    N, C, H, W = x_nchw.shape
    C2 = C // 2
    Cout = 2 * C2
    HW = H * W
    KK = k * k
    pad = (k - 1) // 2
    assert w_hwio.shape == (k, k, C2, Cout)
    assert k % 2 == 1 and Cout % 2 == 0

    # Batch block: fill the 8 sublanes when the batch allows; otherwise take
    # the whole batch in one block (block dim == full dim keeps the layout
    # rule satisfied).  With N >= 16 the grid has >= 2 steps, so the
    # "parallel" axis can shard across v7x's two TensorCores.
    TB = 8 if N % 8 == 0 else N
    grid_n = N // TB

    # Channel-major layout: (N, C, H, W) -> (C, N, H*W) so each per-channel
    # slab is a lane-dense (TB, HW) tile (one-time layout plumbing in XLA).
    x_cm = jnp.transpose(x_nchw.reshape(N, C, HW), (1, 0, 2))

    # Constant folding in the wrapper (O(k*k*C*C), not activation-sized):
    #  - zero-conv logscale: h = (conv + b) * exp(logs * lsf)
    #  - output-channel permutation so torch's "cross" split (s = h[:,0::2],
    #    t = h[:,1::2]) becomes contiguous halves of the accumulator.
    perm = np.concatenate([np.arange(0, Cout, 2), np.arange(1, Cout, 2)])
    scale = jnp.exp(logs * log_scale_factor)                      # (Cout,)
    w_fold = (w_hwio * scale[None, None, None, :])[..., perm]     # (k,k,C2,Cout)
    b_fold = (b * scale)[perm]                                    # (Cout,)
    w_mat = w_fold.reshape(KK * C2, Cout).T.astype(jnp.float32)   # (Cout, KK*C2)
    b_col = b_fold.reshape(Cout, 1).astype(jnp.float32)           # (Cout, 1)

    # Static 0/1 boundary-mask planes, one per conv tap (built once in numpy).
    rows = np.arange(H)[:, None]
    cols = np.arange(W)[None, :]
    masks_np = np.empty((KK, HW), np.float32)
    for kh in range(k):
        dh = kh - pad
        for kw in range(k):
            dw = kw - pad
            ok = ((rows + dh >= 0) & (rows + dh < H) &
                  (cols + dw >= 0) & (cols + dw < W))
            masks_np[kh * k + kw] = ok.reshape(HW).astype(np.float32)
    masks = jnp.asarray(masks_np)

    kernel = _make_coupling_kernel(H, W, C2, Cout, k, HW, TB)

    z_cm, s_sum = pl.pallas_call(
        kernel,
        grid=(grid_n,),
        in_specs=[
            pl.BlockSpec((C, TB, HW), lambda n: (0, n, 0)),       # activations
            pl.BlockSpec((Cout, KK * C2), lambda n: (0, 0)),      # folded W
            pl.BlockSpec((Cout, 1), lambda n: (0, 0)),            # folded bias
            pl.BlockSpec((KK, HW), lambda n: (0, 0)),             # tap masks
        ],
        out_specs=[
            # Only the z2 half (channel block 1) is ever written; z1 is
            # preserved by the input/output alias.
            pl.BlockSpec((C2, TB, HW), lambda n: (1, n, 0)),
            pl.BlockSpec((TB, 1), lambda n: (n, 0)),
        ],
        out_shape=[
            jax.ShapeDtypeStruct((C, N, HW), x_nchw.dtype),
            jax.ShapeDtypeStruct((N, 1), jnp.float32),
        ],
        input_output_aliases={0: 0},        # donate the internal x_cm copy
        compiler_params=pltpu.CompilerParams(
            dimension_semantics=("parallel",)),
    )(x_cm, w_mat, b_col, masks)

    z = jnp.transpose(z_cm, (1, 0, 2)).reshape(N, C, H, W)
    logdet_out = logdet + s_sum[:, 0]
    return z, logdet_out


residual_forward = jax.jit(_residual_forward_impl,
                           static_argnames=("k", "log_scale_factor"))


def residual_forward_ref(x_nchw, logdet, w_hwio, b, logs, k, lsf):
    """Pure-JAX reference matching the PyTorch forward semantics."""
    N, C, H, W = x_nchw.shape
    C2 = C // 2
    x = jnp.transpose(x_nchw, (0, 2, 3, 1))
    z1, z2 = x[..., :C2], x[..., C2:]
    h = jax.lax.conv_general_dilated(
        z1, w_hwio, window_strides=(1, 1), padding='SAME',
        dimension_numbers=('NHWC', 'HWIO', 'NHWC'))
    h = h + b[None, None, None, :]
    h = h * jnp.exp(logs * lsf)[None, None, None, :]
    s = jnp.tanh(h[..., 0::2])
    t = h[..., 1::2]
    z2n = (z2 + t) * jnp.exp(s)
    z = jnp.concatenate([z1, z2n], axis=-1)
    logdet_out = logdet + jnp.sum(s, axis=(1, 2, 3))
    return jnp.transpose(z, (0, 3, 1, 2)), logdet_out


if __name__ == "__main__":
    key = jax.random.PRNGKey(0)
    kx, kw_, kb, kl, kd = jax.random.split(key, 5)

    N, C, H, W = 2, 4, 16, 16      # x: [2, 4, 16, 16] (NCHW)
    C2 = C // 2
    Cout = 2 * C2

    x = jax.random.normal(kx, (N, C, H, W), jnp.float32)
    # OpenAiZeroConv is zero-initialized in the reference implementation; use
    # small deterministic random values so the kernel does non-trivial work.
    w = 0.05 * jax.random.normal(kw_, (K, K, C2, Cout), jnp.float32)   # HWIO
    b = 0.01 * jax.random.normal(kb, (Cout,), jnp.float32)
    logs = 0.1 * jax.random.normal(kl, (Cout,), jnp.float32)
    logdet_in = jax.random.normal(kd, (N,), jnp.float32)

    z, logdet = residual_forward(x, logdet_in, w, b, logs)
    jax.block_until_ready((z, logdet))

    z_ref, logdet_ref = residual_forward_ref(x, logdet_in, w, b, logs,
                                             K, LOG_SCALE_FACTOR)
    assert np.allclose(np.asarray(z), np.asarray(z_ref), atol=1e-5, rtol=1e-5)
    assert np.allclose(np.asarray(logdet), np.asarray(logdet_ref),
                       atol=1e-4, rtol=1e-5)
    print("KERNEL_OK")
</pallas_src>

<mosaic_0001>
module attributes {stable_mosaic.version = 11 : i64} {
  func.func @kernel(%arg0: i32, %arg1: memref<4x2x256xf32, #tpu.memory_space<vmem>>, %arg2: memref<4x18xf32, #tpu.memory_space<vmem>>, %arg3: memref<4x1xf32, #tpu.memory_space<vmem>>, %arg4: memref<9x256xf32, #tpu.memory_space<vmem>>, %arg5: memref<2x2x256xf32, #tpu.memory_space<vmem>>, %arg6: memref<2x1xf32, #tpu.memory_space<vmem>>) attributes {dimension_semantics = [#tpu.dimension_semantics<parallel>], iteration_bounds = array<i64: 1>, scalar_prefetch = 0 : i64, scratch_operands = 0 : i64, tpu.core_type = #tpu.core_type<tc>, window_params = [{transform_indices = @transform_0, window_bounds = array<i64: 4, 2, 256>}, {pipeline_mode = #tpu.pipeline_mode<synchronous>, transform_indices = @transform_1, window_bounds = array<i64: 4, 18>}, {pipeline_mode = #tpu.pipeline_mode<synchronous>, transform_indices = @transform_2, window_bounds = array<i64: 4, 1>}, {pipeline_mode = #tpu.pipeline_mode<synchronous>, transform_indices = @transform_3, window_bounds = array<i64: 9, 256>}, {transform_indices = @transform_4, window_bounds = array<i64: 2, 2, 256>}, {transform_indices = @transform_5, window_bounds = array<i64: 2, 1>}]} {
    %c0 = arith.constant 0 : index
    %c0_0 = arith.constant 0 : index
    %c0_1 = arith.constant 0 : index
    %0 = vector.load %arg1[%c0, %c0_0, %c0_1] : memref<4x2x256xf32, #tpu.memory_space<vmem>>, vector<4x2x256xf32>
    %1 = vector.extract_strided_slice %0 {offsets = [2, 0, 0], sizes = [2, 2, 256], strides = [1, 1, 1]} : vector<4x2x256xf32> to vector<2x2x256xf32>
    %c0_2 = arith.constant 0 : index
    %c0_3 = arith.constant 0 : index
    %2 = vector.load %arg2[%c0_2, %c0_3] : memref<4x18xf32, #tpu.memory_space<vmem>>, vector<4x18xf32>
    %c0_4 = arith.constant 0 : index
    %c0_5 = arith.constant 0 : index
    %3 = vector.load %arg3[%c0_4, %c0_5] : memref<4x1xf32, #tpu.memory_space<vmem>>, vector<4x1xf32>
    %c0_6 = arith.constant 0 : index
    %c0_7 = arith.constant 0 : index
    %4 = vector.load %arg4[%c0_6, %c0_7] : memref<9x256xf32, #tpu.memory_space<vmem>>, vector<9x256xf32>
    %cst = arith.constant 0.000000e+00 : f32
    %5 = vector.broadcast %cst : f32 to vector<4x2x256xf32>
    %6 = vector.extract_strided_slice %4 {offsets = [0, 0], sizes = [1, 256], strides = [1, 1]} : vector<9x256xf32> to vector<1x256xf32>
    %7 = vector.extract_strided_slice %0 {offsets = [0, 0, 0], sizes = [1, 2, 256], strides = [1, 1, 1]} : vector<4x2x256xf32> to vector<1x2x256xf32>
    %8 = vector.shape_cast %7 : vector<1x2x256xf32> to vector<2x256xf32>
    %c17_i32 = arith.constant 17 : i32
    %9 = tpu.dynamic_rotate %8 by %c17_i32 dim 1 : vector<2x256xf32>, i32 -> vector<2x256xf32>
    %10 = vector.broadcast %6 : vector<1x256xf32> to vector<2x256xf32>
    %11 = arith.mulf %9, %10 : vector<2x256xf32>
    %12 = vector.extract_strided_slice %2 {offsets = [0, 0], sizes = [4, 1], strides = [1, 1]} : vector<4x18xf32> to vector<4x1xf32>
    %13 = vector.shape_cast %12 : vector<4x1xf32> to vector<4x1x1xf32>
    %14 = vector.shape_cast %11 : vector<2x256xf32> to vector<1x2x256xf32>
    %15 = vector.broadcast %14 : vector<1x2x256xf32> to vector<4x2x256xf32>
    %16 = vector.broadcast %13 : vector<4x1x1xf32> to vector<4x2x256xf32>
    %17 = arith.mulf %15, %16 : vector<4x2x256xf32>
    %18 = arith.addf %5, %17 : vector<4x2x256xf32>
    %19 = vector.extract_strided_slice %0 {offsets = [1, 0, 0], sizes = [1, 2, 256], strides = [1, 1, 1]} : vector<4x2x256xf32> to vector<1x2x256xf32>
    %20 = vector.shape_cast %19 : vector<1x2x256xf32> to vector<2x256xf32>
    %c17_i32_8 = arith.constant 17 : i32
    %21 = tpu.dynamic_rotate %20 by %c17_i32_8 dim 1 : vector<2x256xf32>, i32 -> vector<2x256xf32>
    %22 = vector.broadcast %6 : vector<1x256xf32> to vector<2x256xf32>
    %23 = arith.mulf %21, %22 : vector<2x256xf32>
    %24 = vector.extract_strided_slice %2 {offsets = [0, 1], sizes = [4, 1], strides = [1, 1]} : vector<4x18xf32> to vector<4x1xf32>
    %25 = vector.shape_cast %24 : vector<4x1xf32> to vector<4x1x1xf32>
    %26 = vector.shape_cast %23 : vector<2x256xf32> to vector<1x2x256xf32>
    %27 = vector.broadcast %26 : vector<1x2x256xf32> to vector<4x2x256xf32>
    %28 = vector.broadcast %25 : vector<4x1x1xf32> to vector<4x2x256xf32>
    %29 = arith.mulf %27, %28 : vector<4x2x256xf32>
    %30 = arith.addf %18, %29 : vector<4x2x256xf32>
    %31 = vector.extract_strided_slice %4 {offsets = [1, 0], sizes = [1, 256], strides = [1, 1]} : vector<9x256xf32> to vector<1x256xf32>
    %32 = vector.extract_strided_slice %0 {offsets = [0, 0, 0], sizes = [1, 2, 256], strides = [1, 1, 1]} : vector<4x2x256xf32> to vector<1x2x256xf32>
    %33 = vector.shape_cast %32 : vector<1x2x256xf32> to vector<2x256xf32>
    %c16_i32 = arith.constant 16 : i32
    %34 = tpu.dynamic_rotate %33 by %c16_i32 dim 1 : vector<2x256xf32>, i32 -> vector<2x256xf32>
    %35 = vector.broadcast %31 : vector<1x256xf32> to vector<2x256xf32>
    %36 = arith.mulf %34, %35 : vector<2x256xf32>
    %37 = vector.extract_strided_slice %2 {offsets = [0, 2], sizes = [4, 1], strides = [1, 1]} : vector<4x18xf32> to vector<4x1xf32>
    %38 = vector.shape_cast %37 : vector<4x1xf32> to vector<4x1x1xf32>
    %39 = vector.shape_cast %36 : vector<2x256xf32> to vector<1x2x256xf32>
    %40 = vector.broadcast %39 : vector<1x2x256xf32> to vector<4x2x256xf32>
    %41 = vector.broadcast %38 : vector<4x1x1xf32> to vector<4x2x256xf32>
    %42 = arith.mulf %40, %41 : vector<4x2x256xf32>
    %43 = arith.addf %30, %42 : vector<4x2x256xf32>
    %44 = vector.extract_strided_slice %0 {offsets = [1, 0, 0], sizes = [1, 2, 256], strides = [1, 1, 1]} : vector<4x2x256xf32> to vector<1x2x256xf32>
    %45 = vector.shape_cast %44 : vector<1x2x256xf32> to vector<2x256xf32>
    %c16_i32_9 = arith.constant 16 : i32
    %46 = tpu.dynamic_rotate %45 by %c16_i32_9 dim 1 : vector<2x256xf32>, i32 -> vector<2x256xf32>
    %47 = vector.broadcast %31 : vector<1x256xf32> to vector<2x256xf32>
    %48 = arith.mulf %46, %47 : vector<2x256xf32>
    %49 = vector.extract_strided_slice %2 {offsets = [0, 3], sizes = [4, 1], strides = [1, 1]} : vector<4x18xf32> to vector<4x1xf32>
    %50 = vector.shape_cast %49 : vector<4x1xf32> to vector<4x1x1xf32>
    %51 = vector.shape_cast %48 : vector<2x256xf32> to vector<1x2x256xf32>
    %52 = vector.broadcast %51 : vector<1x2x256xf32> to vector<4x2x256xf32>
    %53 = vector.broadcast %50 : vector<4x1x1xf32> to vector<4x2x256xf32>
    %54 = arith.mulf %52, %53 : vector<4x2x256xf32>
    %55 = arith.addf %43, %54 : vector<4x2x256xf32>
    %56 = vector.extract_strided_slice %4 {offsets = [2, 0], sizes = [1, 256], strides = [1, 1]} : vector<9x256xf32> to vector<1x256xf32>
    %57 = vector.extract_strided_slice %0 {offsets = [0, 0, 0], sizes = [1, 2, 256], strides = [1, 1, 1]} : vector<4x2x256xf32> to vector<1x2x256xf32>
    %58 = vector.shape_cast %57 : vector<1x2x256xf32> to vector<2x256xf32>
    %c15_i32 = arith.constant 15 : i32
    %59 = tpu.dynamic_rotate %58 by %c15_i32 dim 1 : vector<2x256xf32>, i32 -> vector<2x256xf32>
    %60 = vector.broadcast %56 : vector<1x256xf32> to vector<2x256xf32>
    %61 = arith.mulf %59, %60 : vector<2x256xf32>
    %62 = vector.extract_strided_slice %2 {offsets = [0, 4], sizes = [4, 1], strides = [1, 1]} : vector<4x18xf32> to vector<4x1xf32>
    %63 = vector.shape_cast %62 : vector<4x1xf32> to vector<4x1x1xf32>
    %64 = vector.shape_cast %61 : vector<2x256xf32> to vector<1x2x256xf32>
    %65 = vector.broadcast %64 : vector<1x2x256xf32> to vector<4x2x256xf32>
    %66 = vector.broadcast %63 : vector<4x1x1xf32> to vector<4x2x256xf32>
    %67 = arith.mulf %65, %66 : vector<4x2x256xf32>
    %68 = arith.addf %55, %67 : vector<4x2x256xf32>
    %69 = vector.extract_strided_slice %0 {offsets = [1, 0, 0], sizes = [1, 2, 256], strides = [1, 1, 1]} : vector<4x2x256xf32> to vector<1x2x256xf32>
    %70 = vector.shape_cast %69 : vector<1x2x256xf32> to vector<2x256xf32>
    %c15_i32_10 = arith.constant 15 : i32
    %71 = tpu.dynamic_rotate %70 by %c15_i32_10 dim 1 : vector<2x256xf32>, i32 -> vector<2x256xf32>
    %72 = vector.broadcast %56 : vector<1x256xf32> to vector<2x256xf32>
    %73 = arith.mulf %71, %72 : vector<2x256xf32>
    %74 = vector.extract_strided_slice %2 {offsets = [0, 5], sizes = [4, 1], strides = [1, 1]} : vector<4x18xf32> to vector<4x1xf32>
    %75 = vector.shape_cast %74 : vector<4x1xf32> to vector<4x1x1xf32>
    %76 = vector.shape_cast %73 : vector<2x256xf32> to vector<1x2x256xf32>
    %77 = vector.broadcast %76 : vector<1x2x256xf32> to vector<4x2x256xf32>
    %78 = vector.broadcast %75 : vector<4x1x1xf32> to vector<4x2x256xf32>
    %79 = arith.mulf %77, %78 : vector<4x2x256xf32>
    %80 = arith.addf %68, %79 : vector<4x2x256xf32>
    %81 = vector.extract_strided_slice %4 {offsets = [3, 0], sizes = [1, 256], strides = [1, 1]} : vector<9x256xf32> to vector<1x256xf32>
    %82 = vector.extract_strided_slice %0 {offsets = [0, 0, 0], sizes = [1, 2, 256], strides = [1, 1, 1]} : vector<4x2x256xf32> to vector<1x2x256xf32>
    %83 = vector.shape_cast %82 : vector<1x2x256xf32> to vector<2x256xf32>
    %c1_i32 = arith.constant 1 : i32
    %84 = tpu.dynamic_rotate %83 by %c1_i32 dim 1 : vector<2x256xf32>, i32 -> vector<2x256xf32>
    %85 = vector.broadcast %81 : vector<1x256xf32> to vector<2x256xf32>
    %86 = arith.mulf %84, %85 : vector<2x256xf32>
    %87 = vector.extract_strided_slice %2 {offsets = [0, 6], sizes = [4, 1], strides = [1, 1]} : vector<4x18xf32> to vector<4x1xf32>
    %88 = vector.shape_cast %87 : vector<4x1xf32> to vector<4x1x1xf32>
    %89 = vector.shape_cast %86 : vector<2x256xf32> to vector<1x2x256xf32>
    %90 = vector.broadcast %89 : vector<1x2x256xf32> to vector<4x2x256xf32>
    %91 = vector.broadcast %88 : vector<4x1x1xf32> to vector<4x2x256xf32>
    %92 = arith.mulf %90, %91 : vector<4x2x256xf32>
    %93 = arith.addf %80, %92 : vector<4x2x256xf32>
    %94 = vector.extract_strided_slice %0 {offsets = [1, 0, 0], sizes = [1, 2, 256], strides = [1, 1, 1]} : vector<4x2x256xf32> to vector<1x2x256xf32>
    %95 = vector.shape_cast %94 : vector<1x2x256xf32> to vector<2x256xf32>
    %c1_i32_11 = arith.constant 1 : i32
    %96 = tpu.dynamic_rotate %95 by %c1_i32_11 dim 1 : vector<2x256xf32>, i32 -> vector<2x256xf32>
    %97 = vector.broadcast %81 : vector<1x256xf32> to vector<2x256xf32>
    %98 = arith.mulf %96, %97 : vector<2x256xf32>
    %99 = vector.extract_strided_slice %2 {offsets = [0, 7], sizes = [4, 1], strides = [1, 1]} : vector<4x18xf32> to vector<4x1xf32>
    %100 = vector.shape_cast %99 : vector<4x1xf32> to vector<4x1x1xf32>
    %101 = vector.shape_cast %98 : vector<2x256xf32> to vector<1x2x256xf32>
    %102 = vector.broadcast %101 : vector<1x2x256xf32> to vector<4x2x256xf32>
    %103 = vector.broadcast %100 : vector<4x1x1xf32> to vector<4x2x256xf32>
    %104 = arith.mulf %102, %103 : vector<4x2x256xf32>
    %105 = arith.addf %93, %104 : vector<4x2x256xf32>
    %106 = vector.extract_strided_slice %0 {offsets = [0, 0, 0], sizes = [1, 2, 256], strides = [1, 1, 1]} : vector<4x2x256xf32> to vector<1x2x256xf32>
    %107 = vector.shape_cast %106 : vector<1x2x256xf32> to vector<2x256xf32>
    %108 = vector.extract_strided_slice %2 {offsets = [0, 8], sizes = [4, 1], strides = [1, 1]} : vector<4x18xf32> to vector<4x1xf32>
    %109 = vector.shape_cast %108 : vector<4x1xf32> to vector<4x1x1xf32>
    %110 = vector.shape_cast %107 : vector<2x256xf32> to vector<1x2x256xf32>
    %111 = vector.broadcast %110 : vector<1x2x256xf32> to vector<4x2x256xf32>
    %112 = vector.broadcast %109 : vector<4x1x1xf32> to vector<4x2x256xf32>
    %113 = arith.mulf %111, %112 : vector<4x2x256xf32>
    %114 = arith.addf %105, %113 : vector<4x2x256xf32>
    %115 = vector.extract_strided_slice %0 {offsets = [1, 0, 0], sizes = [1, 2, 256], strides = [1, 1, 1]} : vector<4x2x256xf32> to vector<1x2x256xf32>
    %116 = vector.shape_cast %115 : vector<1x2x256xf32> to vector<2x256xf32>
    %117 = vector.extract_strided_slice %2 {offsets = [0, 9], sizes = [4, 1], strides = [1, 1]} : vector<4x18xf32> to vector<4x1xf32>
    %118 = vector.shape_cast %117 : vector<4x1xf32> to vector<4x1x1xf32>
    %119 = vector.shape_cast %116 : vector<2x256xf32> to vector<1x2x256xf32>
    %120 = vector.broadcast %119 : vector<1x2x256xf32> to vector<4x2x256xf32>
    %121 = vector.broadcast %118 : vector<4x1x1xf32> to vector<4x2x256xf32>
    %122 = arith.mulf %120, %121 : vector<4x2x256xf32>
    %123 = arith.addf %114, %122 : vector<4x2x256xf32>
    %124 = vector.extract_strided_slice %4 {offsets = [5, 0], sizes = [1, 256], strides = [1, 1]} : vector<9x256xf32> to vector<1x256xf32>
    %125 = vector.extract_strided_slice %0 {offsets = [0, 0, 0], sizes = [1, 2, 256], strides = [1, 1, 1]} : vector<4x2x256xf32> to vector<1x2x256xf32>
    %126 = vector.shape_cast %125 : vector<1x2x256xf32> to vector<2x256xf32>
    %c255_i32 = arith.constant 255 : i32
    %127 = tpu.dynamic_rotate %126 by %c255_i32 dim 1 : vector<2x256xf32>, i32 -> vector<2x256xf32>
    %128 = vector.broadcast %124 : vector<1x256xf32> to vector<2x256xf32>
    %129 = arith.mulf %127, %128 : vector<2x256xf32>
    %130 = vector.extract_strided_slice %2 {offsets = [0, 10], sizes = [4, 1], strides = [1, 1]} : vector<4x18xf32> to vector<4x1xf32>
    %131 = vector.shape_cast %130 : vector<4x1xf32> to vector<4x1x1xf32>
    %132 = vector.shape_cast %129 : vector<2x256xf32> to vector<1x2x256xf32>
    %133 = vector.broadcast %132 : vector<1x2x256xf32> to vector<4x2x256xf32>
    %134 = vector.broadcast %131 : vector<4x1x1xf32> to vector<4x2x256xf32>
    %135 = arith.mulf %133, %134 : vector<4x2x256xf32>
    %136 = arith.addf %123, %135 : vector<4x2x256xf32>
    %137 = vector.extract_strided_slice %0 {offsets = [1, 0, 0], sizes = [1, 2, 256], strides = [1, 1, 1]} : vector<4x2x256xf32> to vector<1x2x256xf32>
    %138 = vector.shape_cast %137 : vector<1x2x256xf32> to vector<2x256xf32>
    %c255_i32_12 = arith.constant 255 : i32
    %139 = tpu.dynamic_rotate %138 by %c255_i32_12 dim 1 : vector<2x256xf32>, i32 -> vector<2x256xf32>
    %140 = vector.broadcast %124 : vector<1x256xf32> to vector<2x256xf32>
    %141 = arith.mulf %139, %140 : vector<2x256xf32>
    %142 = vector.extract_strided_slice %2 {offsets = [0, 11], sizes = [4, 1], strides = [1, 1]} : vector<4x18xf32> to vector<4x1xf32>
    %143 = vector.shape_cast %142 : vector<4x1xf32> to vector<4x1x1xf32>
    %144 = vector.shape_cast %141 : vector<2x256xf32> to vector<1x2x256xf32>
    %145 = vector.broadcast %144 : vector<1x2x256xf32> to vector<4x2x256xf32>
    %146 = vector.broadcast %143 : vector<4x1x1xf32> to vector<4x2x256xf32>
    %147 = arith.mulf %145, %146 : vector<4x2x256xf32>
    %148 = arith.addf %136, %147 : vector<4x2x256xf32>
    %149 = vector.extract_strided_slice %4 {offsets = [6, 0], sizes = [1, 256], strides = [1, 1]} : vector<9x256xf32> to vector<1x256xf32>
    %150 = vector.extract_strided_slice %0 {offsets = [0, 0, 0], sizes = [1, 2, 256], strides = [1, 1, 1]} : vector<4x2x256xf32> to vector<1x2x256xf32>
    %151 = vector.shape_cast %150 : vector<1x2x256xf32> to vector<2x256xf32>
    %c241_i32 = arith.constant 241 : i32
    %152 = tpu.dynamic_rotate %151 by %c241_i32 dim 1 : vector<2x256xf32>, i32 -> vector<2x256xf32>
    %153 = vector.broadcast %149 : vector<1x256xf32> to vector<2x256xf32>
    %154 = arith.mulf %152, %153 : vector<2x256xf32>
    %155 = vector.extract_strided_slice %2 {offsets = [0, 12], sizes = [4, 1], strides = [1, 1]} : vector<4x18xf32> to vector<4x1xf32>
    %156 = vector.shape_cast %155 : vector<4x1xf32> to vector<4x1x1xf32>
    %157 = vector.shape_cast %154 : vector<2x256xf32> to vector<1x2x256xf32>
    %158 = vector.broadcast %157 : vector<1x2x256xf32> to vector<4x2x256xf32>
    %159 = vector.broadcast %156 : vector<4x1x1xf32> to vector<4x2x256xf32>
    %160 = arith.mulf %158, %159 : vector<4x2x256xf32>
    %161 = arith.addf %148, %160 : vector<4x2x256xf32>
    %162 = vector.extract_strided_slice %0 {offsets = [1, 0, 0], sizes = [1, 2, 256], strides = [1, 1, 1]} : vector<4x2x256xf32> to vector<1x2x256xf32>
    %163 = vector.shape_cast %162 : vector<1x2x256xf32> to vector<2x256xf32>
    %c241_i32_13 = arith.constant 241 : i32
    %164 = tpu.dynamic_rotate %163 by %c241_i32_13 dim 1 : vector<2x256xf32>, i32 -> vector<2x256xf32>
    %165 = vector.broadcast %149 : vector<1x256xf32> to vector<2x256xf32>
    %166 = arith.mulf %164, %165 : vector<2x256xf32>
    %167 = vector.extract_strided_slice %2 {offsets = [0, 13], sizes = [4, 1], strides = [1, 1]} : vector<4x18xf32> to vector<4x1xf32>
    %168 = vector.shape_cast %167 : vector<4x1xf32> to vector<4x1x1xf32>
    %169 = vector.shape_cast %166 : vector<2x256xf32> to vector<1x2x256xf32>
    %170 = vector.broadcast %169 : vector<1x2x256xf32> to vector<4x2x256xf32>
    %171 = vector.broadcast %168 : vector<4x1x1xf32> to vector<4x2x256xf32>
    %172 = arith.mulf %170, %171 : vector<4x2x256xf32>
    %173 = arith.addf %161, %172 : vector<4x2x256xf32>
    %174 = vector.extract_strided_slice %4 {offsets = [7, 0], sizes = [1, 256], strides = [1, 1]} : vector<9x256xf32> to vector<1x256xf32>
    %175 = vector.extract_strided_slice %0 {offsets = [0, 0, 0], sizes = [1, 2, 256], strides = [1, 1, 1]} : vector<4x2x256xf32> to vector<1x2x256xf32>
    %176 = vector.shape_cast %175 : vector<1x2x256xf32> to vector<2x256xf32>
    %c240_i32 = arith.constant 240 : i32
    %177 = tpu.dynamic_rotate %176 by %c240_i32 dim 1 : vector<2x256xf32>, i32 -> vector<2x256xf32>
    %178 = vector.broadcast %174 : vector<1x256xf32> to vector<2x256xf32>
    %179 = arith.mulf %177, %178 : vector<2x256xf32>
    %180 = vector.extract_strided_slice %2 {offsets = [0, 14], sizes = [4, 1], strides = [1, 1]} : vector<4x18xf32> to vector<4x1xf32>
    %181 = vector.shape_cast %180 : vector<4x1xf32> to vector<4x1x1xf32>
    %182 = vector.shape_cast %179 : vector<2x256xf32> to vector<1x2x256xf32>
    %183 = vector.broadcast %182 : vector<1x2x256xf32> to vector<4x2x256xf32>
    %184 = vector.broadcast %181 : vector<4x1x1xf32> to vector<4x2x256xf32>
    %185 = arith.mulf %183, %184 : vector<4x2x256xf32>
    %186 = arith.addf %173, %185 : vector<4x2x256xf32>
    %187 = vector.extract_strided_slice %0 {offsets = [1, 0, 0], sizes = [1, 2, 256], strides = [1, 1, 1]} : vector<4x2x256xf32> to vector<1x2x256xf32>
    %188 = vector.shape_cast %187 : vector<1x2x256xf32> to vector<2x256xf32>
    %c240_i32_14 = arith.constant 240 : i32
    %189 = tpu.dynamic_rotate %188 by %c240_i32_14 dim 1 : vector<2x256xf32>, i32 -> vector<2x256xf32>
    %190 = vector.broadcast %174 : vector<1x256xf32> to vector<2x256xf32>
    %191 = arith.mulf %189, %190 : vector<2x256xf32>
    %192 = vector.extract_strided_slice %2 {offsets = [0, 15], sizes = [4, 1], strides = [1, 1]} : vector<4x18xf32> to vector<4x1xf32>
    %193 = vector.shape_cast %192 : vector<4x1xf32> to vector<4x1x1xf32>
    %194 = vector.shape_cast %191 : vector<2x256xf32> to vector<1x2x256xf32>
    %195 = vector.broadcast %194 : vector<1x2x256xf32> to vector<4x2x256xf32>
    %196 = vector.broadcast %193 : vector<4x1x1xf32> to vector<4x2x256xf32>
    %197 = arith.mulf %195, %196 : vector<4x2x256xf32>
    %198 = arith.addf %186, %197 : vector<4x2x256xf32>
    %199 = vector.extract_strided_slice %4 {offsets = [8, 0], sizes = [1, 256], strides = [1, 1]} : vector<9x256xf32> to vector<1x256xf32>
    %200 = vector.extract_strided_slice %0 {offsets = [0, 0, 0], sizes = [1, 2, 256], strides = [1, 1, 1]} : vector<4x2x256xf32> to vector<1x2x256xf32>
    %201 = vector.shape_cast %200 : vector<1x2x256xf32> to vector<2x256xf32>
    %c239_i32 = arith.constant 239 : i32
    %202 = tpu.dynamic_rotate %201 by %c239_i32 dim 1 : vector<2x256xf32>, i32 -> vector<2x256xf32>
    %203 = vector.broadcast %199 : vector<1x256xf32> to vector<2x256xf32>
    %204 = arith.mulf %202, %203 : vector<2x256xf32>
    %205 = vector.extract_strided_slice %2 {offsets = [0, 16], sizes = [4, 1], strides = [1, 1]} : vector<4x18xf32> to vector<4x1xf32>
    %206 = vector.shape_cast %205 : vector<4x1xf32> to vector<4x1x1xf32>
    %207 = vector.shape_cast %204 : vector<2x256xf32> to vector<1x2x256xf32>
    %208 = vector.broadcast %207 : vector<1x2x256xf32> to vector<4x2x256xf32>
    %209 = vector.broadcast %206 : vector<4x1x1xf32> to vector<4x2x256xf32>
    %210 = arith.mulf %208, %209 : vector<4x2x256xf32>
    %211 = arith.addf %198, %210 : vector<4x2x256xf32>
    %212 = vector.extract_strided_slice %0 {offsets = [1, 0, 0], sizes = [1, 2, 256], strides = [1, 1, 1]} : vector<4x2x256xf32> to vector<1x2x256xf32>
    %213 = vector.shape_cast %212 : vector<1x2x256xf32> to vector<2x256xf32>
    %c239_i32_15 = arith.constant 239 : i32
    %214 = tpu.dynamic_rotate %213 by %c239_i32_15 dim 1 : vector<2x256xf32>, i32 -> vector<2x256xf32>
    %215 = vector.broadcast %199 : vector<1x256xf32> to vector<2x256xf32>
    %216 = arith.mulf %214, %215 : vector<2x256xf32>
    %217 = vector.extract_strided_slice %2 {offsets = [0, 17], sizes = [4, 1], strides = [1, 1]} : vector<4x18xf32> to vector<4x1xf32>
    %218 = vector.shape_cast %217 : vector<4x1xf32> to vector<4x1x1xf32>
    %219 = vector.shape_cast %216 : vector<2x256xf32> to vector<1x2x256xf32>
    %220 = vector.broadcast %219 : vector<1x2x256xf32> to vector<4x2x256xf32>
    %221 = vector.broadcast %218 : vector<4x1x1xf32> to vector<4x2x256xf32>
    %222 = arith.mulf %220, %221 : vector<4x2x256xf32>
    %223 = arith.addf %211, %222 : vector<4x2x256xf32>
    %224 = vector.shape_cast %3 : vector<4x1xf32> to vector<4x1x1xf32>
    %225 = vector.extract_strided_slice %223 {offsets = [0, 0, 0], sizes = [2, 2, 256], strides = [1, 1, 1]} : vector<4x2x256xf32> to vector<2x2x256xf32>
    %226 = vector.extract_strided_slice %224 {offsets = [0, 0, 0], sizes = [2, 1, 1], strides = [1, 1, 1]} : vector<4x1x1xf32> to vector<2x1x1xf32>
    %227 = vector.broadcast %226 : vector<2x1x1xf32> to vector<2x2x256xf32>
    %228 = arith.addf %225, %227 : vector<2x2x256xf32>
    %229 = math.tanh %228 : vector<2x2x256xf32>
    %230 = vector.extract_strided_slice %223 {offsets = [2, 0, 0], sizes = [2, 2, 256], strides = [1, 1, 1]} : vector<4x2x256xf32> to vector<2x2x256xf32>
    %231 = vector.extract_strided_slice %224 {offsets = [2, 0, 0], sizes = [2, 1, 1], strides = [1, 1, 1]} : vector<4x1x1xf32> to vector<2x1x1xf32>
    %232 = vector.broadcast %231 : vector<2x1x1xf32> to vector<2x2x256xf32>
    %233 = arith.addf %230, %232 : vector<2x2x256xf32>
    %234 = arith.addf %1, %233 : vector<2x2x256xf32>
    %235 = math.exp %229 : vector<2x2x256xf32>
    %236 = arith.mulf %234, %235 : vector<2x2x256xf32>
    %c0_16 = arith.constant 0 : index
    %c0_17 = arith.constant 0 : index
    %c0_18 = arith.constant 0 : index
    %237 = vector.load %arg5[%c0_16, %c0_17, %c0_18] : memref<2x2x256xf32, #tpu.memory_space<vmem>>, vector<2x2x256xf32>
    tpu.vector_store %arg5[%c0_16, %c0_17, %c0_18], %236 {strides = array<i32>} : memref<2x2x256xf32, #tpu.memory_space<vmem>>, vector<2x2x256xf32>,
    %cst_19 = arith.constant dense<0.000000e+00> : vector<2x256xf32>
    %238 = vector.multi_reduction <add>, %229, %cst_19 [0] : vector<2x2x256xf32> to vector<2x256xf32>
    %cst_20 = arith.constant dense<0.000000e+00> : vector<2xf32>
    %239 = vector.multi_reduction <add>, %238, %cst_20 [1] : vector<2x256xf32> to vector<2xf32>
    %240 = vector.shape_cast %239 : vector<2xf32> to vector<2x1xf32>
    %c0_21 = arith.constant 0 : index
    %c0_22 = arith.constant 0 : index
    %241 = vector.load %arg6[%c0_21, %c0_22] : memref<2x1xf32, #tpu.memory_space<vmem>>, vector<2x1xf32>
    tpu.vector_store %arg6[%c0_21, %c0_22], %240 {strides = array<i32>} : memref<2x1xf32, #tpu.memory_space<vmem>>, vector<2x1xf32>,
    return
  }
  func.func @transform_0(%arg0: i32) -> (i32, i32, i32) {
    %c0_i32 = arith.constant 0 : i32
    %c0_i32_0 = arith.constant 0 : i32
    %c0_i32_1 = arith.constant 0 : i32
    return %c0_i32, %arg0, %c0_i32_0 : i32, i32, i32
  }
  func.func @transform_1(%arg0: i32) -> (i32, i32) {
    %c0_i32 = arith.constant 0 : i32
    %c0_i32_0 = arith.constant 0 : i32
    %c0_i32_1 = arith.constant 0 : i32
    return %c0_i32, %c0_i32_0 : i32, i32
  }
  func.func @transform_2(%arg0: i32) -> (i32, i32) {
    %c0_i32 = arith.constant 0 : i32
    %c0_i32_0 = arith.constant 0 : i32
    %c0_i32_1 = arith.constant 0 : i32
    return %c0_i32, %c0_i32_0 : i32, i32
  }
  func.func @transform_3(%arg0: i32) -> (i32, i32) {
    %c0_i32 = arith.constant 0 : i32
    %c0_i32_0 = arith.constant 0 : i32
    %c0_i32_1 = arith.constant 0 : i32
    return %c0_i32, %c0_i32_0 : i32, i32
  }
  func.func @transform_4(%arg0: i32) -> (i32, i32, i32) {
    %c1_i32 = arith.constant 1 : i32
    %c0_i32 = arith.constant 0 : i32
    %c0_i32_0 = arith.constant 0 : i32
    return %c1_i32, %arg0, %c0_i32 : i32, i32, i32
  }
  func.func @transform_5(%arg0: i32) -> (i32, i32) {
    %c0_i32 = arith.constant 0 : i32
    %c0_i32_0 = arith.constant 0 : i32
    return %arg0, %c0_i32 : i32, i32
  }
}

</mosaic_0001>

<bundles_post_ra>
// kernel: _residual_forward_impl.1
= control target key start
LH: loop header
LB: loop body
LE: loop exit
PB: predicated region body
PF: predicated region fallthrough
CT: control target
= control target key end

     0   :  { %v35_v0 = vlaneseq  ;;  %v1202_v1 = vmov 1983009808   ;;  %v1920_v3 = vmov 0   ;;  %v1204_v4 = vmov 1966171168   ;;  %s1207_s24 = smov 16   ;;  %s1910_s0 = inlined_call_operand.vmem [shape: f32[4,2,256], index: 0, kind: input, shape index: {}, may-alias: {0,4}]   ;;  %s1911_s1 = inlined_call_operand.vmem [shape: f32[4,18], index: 1, kind: input, shape index: {}]   ;;  %s1912_s3 = inlined_call_operand.vmem [shape: f32[9,256], index: 3, kind: input, shape index: {}]   ;;  %s1913_s2 = inlined_call_operand.vmem [shape: f32[4,1], index: 2, kind: input, shape index: {}]   ;;  %s1914_s4 = inlined_call_operand.vmem [shape: f32[4,2,256], index: 4, kind: output, shape index: {0}, may-alias: {0,4}]   ;;  %s1915_s5 = inlined_call_operand.vmem [shape: f32[2,1], index: 5, kind: output, shape index: {1}]  }
   0x1   :  { %v33_v2 = vunpack.c.l.s4 %v1202_v1  ;;  %1137 = vset.pattern.permute.xlu1 %v1920_v3  ;;  %v71_v5 = vunpack.c.l.s4 %v1204_v4  ;;  %v1205_v7 = vmov 1   ;;  %v1267_v8 = vld [vmem:[%s1910_s0 + $0x4] sm:$0xf]  ;;  %v1272_v11 = vld [vmem:[%s1910_s0] sm:$0xf]  ;;  %v1208_v28 = vmov 2  }
   0x2   :  { %v1262_v6 = vshrl.u32 %v35_v0, 7  ;;  %1139 = vset.pattern.permute.xlu0 %v1205_v7  ;;  %v1103_v12 = vld.sshfl [vmem:[%s1911_s1] sm:$0x33 pattern:$0x75316420]  ;;  %s1206_s1 = smov 17  }
   0x3   :  { %v34_v9 = vunpack.c.0.s8 %v33_v2  ;;  %v72_v10 = vunpack.c.0.s8 %v71_v5  ;;  %v69_v16 = vcombine.high %v1103_v12, %v1103_v12  ;;  %v1209_v30 = vmov 3   ;;  %s1210_s25 = smov 15   ;;  %s1213_s26 = smov 1   ;;  %v1400_v52 = vld [vmem:[%s1912_s3] sm:$0xff]  ;;  %v1405_v53 = vld [vmem:[%s1912_s3 + $0x8] sm:$0xff] }
   0x4   :  { %v1281_v14 = vsub.s32 0, %v1262_v6  ;;  %v1211_v31 = vmov 4   ;;  %v1212_v32 = vmov 5   ;;  %v1214_v33 = vmov 6   ;;  %s1218_s27 = smov 127   ;;  %s1222_s28 = smov 113  }
   0x5   :  { %v1278_v13 = vsub.s32 %v34_v9, %v1262_v6  ;;  %v1284_v15 = vsub.s32 %v72_v10, %v1262_v6  ;;  %v1215_v34 = vmov 7   ;;  %v1216_v35 = vmov 8   ;;  %s1225_s29 = smov 112  }
   0x6   :  { %v1217_v36 = vmov 9   ;;  %v1219_v37 = vmov 10   ;;  %v1220_v38 = vmov 11   ;;  %v1918_v39 = vmov 13  }
   0x7   :  { %v1288_v17 = vrot.slane %v1267_v8, %v1278_v13  ;;  %v1292_v18 = vrot.slane %v1272_v11, %v1278_v13  ;;  %v76_v19 = vrot.slane %v1103_v12, %v1284_v15  ;;  %v83_v22 = vrot.slane %v69_v16, %v1284_v15  ;;  %v1429_v1 = vld.sshfl [vmem:[%s1913_s2] sm:$0x33 pattern:$0x75316420]  ;;  %s1228_s2 = smov 111  }
   0x8   :  { %v1382_v41 = vand.u32 127, %v35_v0  ;;  %v1917_v42 = vmov 14   ;;  %v1916_v50 = vmov 15   ;;  %v1919_v51 = vmov 16  }
   0x9   :  { %145 = vrot.lane.b32.xlu1 %v1288_v17, %s1206_s1  ;;  %42 = vrot.lane.b32.xlu0 %v1292_v18, %s1206_s1  ;;  %v1298_v20 = vrot.slane %v76_v19, %v1281_v14  ;;  %v1302_v21 = vcombine.high %v1292_v18, %v1292_v18  ;;  %v1308_v23 = vrot.slane %v83_v22, %v1281_v14  ;;  %v1921_v58 = vmov 17  }
   0xa   :  { %v1312_v24 = vcombine.high %v1288_v17, %v1288_v17  ;;  %v85_v25 = vcombine.high %v83_v22, %v83_v22  ;;  %v84_v27 = vcombine.high %v76_v19, %v76_v19  ;;  %vm48_vm0 = vcmp.lt.s32.totalorder %v1382_v41, 17 }
   0xb   :  { %v54_v55 = vrot.slane %v1400_v52, %v1281_v14  ;;  %v58_v56 = vrot.slane %v1405_v53, %v1281_v14  ;;  %v960_v12 = vcombine.high %v1429_v1, %v1429_v1  ;;  %vm189_vm1 = vcmp.lt.s32.totalorder %v1382_v41, 16 }
   0xc   :  { %v1317_v26 = vrot.slane %v85_v25, %v1281_v14  ;;  %v1324_v29 = vrot.slane %v84_v27, %v1281_v14  ;;  %vm278_vm2 = vcmp.lt.s32.totalorder %v1382_v41, 15  ;;  %vm367_vm3 = vcmp.lt.s32.totalorder %v1382_v41, 1 }
   0xd   :  { %103 = vperm.xlu1 %1137, %v1298_v20   ;;  %44 = vrot.lane.b32.xlu0 %v1302_v21, %s1206_s1  ;;  %vm600_vm4 = vcmp.lt.s32.totalorder %v1382_v41, 127  ;;  %vm689_vm5 = vcmp.lt.s32.totalorder %v1382_v41, 113  ;;  %vm778_vm6 = vcmp.lt.s32.totalorder %v1382_v41, 112  ;;  %vm867_vm7 = vcmp.lt.s32.totalorder %v1382_v41, 111 }
   0xe   :  { %vm1079_vm8 = vcmask 1041408   ;;  %vm1091_vm9 = vcmask 1024  }
  0x11   :  { %107 = vperm.xlu1 %1137, %v1308_v23   ;;  %147 = vrot.lane.b32.xlu0 %v1312_v24, %s1206_s1 }
  0x15   :  { %115 = vperm.xlu1 %1137, %v1317_v26   ;;  %158 = vperm.xlu0 %1139, %v1308_v23  }
  0x19   :  { %1138 = vset.pattern.permute.xlu1 %v1205_v7  ;;  %185 = vrot.lane.b32.xlu0 %v1292_v18, %s1207_s24 }
  0x1a   :  { %154 = vperm.xlu1 %1138, %v1298_v20   ;;  %1140 = vset.pattern.permute.xlu0 %v1208_v28 }
  0x1d   :  { %203 = vperm.xlu0 %1140, %v1298_v20  }
  0x1e   :  { %162 = vperm.xlu1 %1138, %v1324_v29  }
  0x21   :  { %215 = vperm.xlu0 %1140, %v1317_v26  }
  0x22   :  { %166 = vperm.xlu1 %1138, %v1317_v26  }
  0x25   :  { %236 = vrot.lane.b32.xlu0 %v1312_v24, %s1207_s24 }
  0x26   :  { %187 = vrot.lane.b32.xlu1 %v1302_v21, %s1207_s24  ;;  %1143 = vset.pattern.permute.xlu0 %v1209_v30 }
  0x27   :  { %1141 = vset.pattern.permute.xlu1 %v1208_v28 }
  0x29   :  { %247 = vperm.xlu0 %1143, %v1308_v23  }
  0x2a   :  { %207 = vperm.xlu1 %1141, %v1308_v23  }
  0x2d   :  { %274 = vrot.lane.b32.xlu0 %v1292_v18, %s1210_s25 }
  0x2e   :  { %211 = vperm.xlu1 %1141, %v1324_v29   ;;  %1144 = vset.pattern.permute.xlu0 %v1211_v31 }
  0x31   :  { %292 = vperm.xlu0 %1144, %v1298_v20  }
  0x32   :  { %234 = vrot.lane.b32.xlu1 %v1288_v17, %s1207_s24 }
  0x33   :  { %1142 = vset.pattern.permute.xlu1 %v1209_v30  ;;  %v1447_v30 = vrot.slane %v960_v12, %v1284_v15 }
  0x35   :  { %304 = vperm.xlu0 %1144, %v1317_v26  }
  0x36   :  { %243 = vperm.xlu1 %1142, %v1298_v20  }
  0x39   :  { %325 = vrot.lane.b32.xlu0 %v1312_v24, %s1210_s25 }
  0x3a   :  { %251 = vperm.xlu1 %1142, %v1324_v29   ;;  %1147 = vset.pattern.permute.xlu0 %v1212_v32 }
  0x3d   :  { %336 = vperm.xlu0 %1147, %v1308_v23  }
  0x3e   :  { %255 = vperm.xlu1 %1142, %v1317_v26  }
  0x41   :  { %363 = vrot.lane.b32.xlu0 %v1292_v18, %s1213_s26 }
  0x42   :  { %276 = vrot.lane.b32.xlu1 %v1302_v21, %s1210_s25  ;;  %1148 = vset.pattern.permute.xlu0 %v1214_v33 }
  0x43   :  { %1145 = vset.pattern.permute.xlu1 %v1211_v31 }
  0x45   :  { %381 = vperm.xlu0 %1148, %v1298_v20  }
  0x46   :  { %296 = vperm.xlu1 %1145, %v1308_v23  }
  0x49   :  { %393 = vperm.xlu0 %1148, %v1317_v26  }
  0x4a   :  { %300 = vperm.xlu1 %1145, %v1324_v29  }
  0x4d   :  { %414 = vrot.lane.b32.xlu0 %v1312_v24, %s1213_s26 }
  0x4e   :  { %323 = vrot.lane.b32.xlu1 %v1288_v17, %s1210_s25  ;;  %1151 = vset.pattern.permute.xlu0 %v1215_v34 }
  0x4f   :  { %1146 = vset.pattern.permute.xlu1 %v1212_v32 }
  0x51   :  { %425 = vperm.xlu0 %1151, %v1308_v23  }
  0x52   :  { %332 = vperm.xlu1 %1146, %v1298_v20  }
  0x55   :  { %1152 = vset.pattern.permute.xlu0 %v1216_v35 }
  0x56   :  { %340 = vperm.xlu1 %1146, %v1324_v29   ;;  %453 = vperm.xlu0 %1152, %v1298_v20  }
  0x5a   :  { %344 = vperm.xlu1 %1146, %v1317_v26   ;;  %465 = vperm.xlu0 %1152, %v1317_v26  }
  0x5e   :  { %365 = vrot.lane.b32.xlu1 %v1302_v21, %s1213_s26  ;;  %1155 = vset.pattern.permute.xlu0 %v1217_v36 }
  0x5f   :  { %529 = vperm.xlu0 %1155, %v1308_v23   ;;  %1149 = vset.pattern.permute.xlu1 %v1214_v33 }
  0x62   :  { %385 = vperm.xlu1 %1149, %v1308_v23  }
  0x63   :  { %596 = vrot.lane.b32.xlu0 %v1292_v18, %s1218_s27 }
  0x64   :  { %1156 = vset.pattern.permute.xlu0 %v1219_v37 }
  0x66   :  { %389 = vperm.xlu1 %1149, %v1324_v29  }
  0x67   :  { %614 = vperm.xlu0 %1156, %v1298_v20  }
  0x6a   :  { %412 = vrot.lane.b32.xlu1 %v1288_v17, %s1213_s26 }
  0x6b   :  { %626 = vperm.xlu0 %1156, %v1317_v26   ;;  %1150 = vset.pattern.permute.xlu1 %v1215_v34 }
  0x6e   :  { %421 = vperm.xlu1 %1150, %v1298_v20  }
  0x6f   :  { %1159 = vset.pattern.permute.xlu0 %v1220_v38 }
  0x70   :  { %658 = vperm.xlu0 %1159, %v1308_v23  }
  0x72   :  { %429 = vperm.xlu1 %1150, %v1324_v29  }
  0x74   :  { %645 = vrot.lane.b32.xlu0 %v1288_v17, %s1218_s27 }
  0x75   :  { %1161 = vset.pattern.permute.xlu0 %v1918_v39 }
  0x76   :  { %433 = vperm.xlu1 %1150, %v1317_v26  }
  0x78   :  { %743 = vperm.xlu0 %1161, %v1298_v20  }
  0x7a   :  { %1153 = vset.pattern.permute.xlu1 %v1216_v35  ;;  %v194_v35 = vsub.s32 1, %v1262_v6 }
  0x7b   :  { %v43_v40 = vpop.permute.xlu0 %42  ;;  %457 = vperm.xlu1 %1153, %v1308_v23   ;;  %v146_v46 = vpop.permute.xlu1 %145 }
  0x7c   :  { %687 = vrot.lane.b32.xlu0 %v1302_v21, %s1222_s28 }
  0x7d   :  { %1164 = vset.pattern.permute.xlu0 %v1917_v42 }
  0x7f   :  { %461 = vperm.xlu1 %1153, %v1324_v29   ;;  %v45_v43 = vpop.permute.xlu0 %44 }
  0x80   :  { %v49_v44 = vsel %vm48_vm0, %v43_v40, %v45_v43  ;;  %v50_v45 = vsel %vm48_vm0, %v45_v43, %v43_v40  ;;  %796 = vperm.xlu0 %1164, %v1308_v23   ;;  %v1229_v40 = vmov 12  }
  0x81   :  { %v1417_v59 = vmul.f32 %v54_v55, %v50_v45  ;;  %v1419_v60 = vmul.f32 %v58_v56, %v49_v44 }
  0x83   :  { %1154 = vset.pattern.permute.xlu1 %v1217_v36  ;;  %v148_v47 = vpop.permute.xlu0 %147 }
  0x84   :  { %v149_v48 = vsel %vm48_vm0, %v146_v46, %v148_v47  ;;  %v150_v49 = vsel %vm48_vm0, %v148_v47, %v146_v46  ;;  %525 = vperm.xlu1 %1154, %v1298_v20   ;;  %1165 = vset.pattern.permute.xlu0 %v1916_v50  ;;  %v195_v47 = vrot.slane %v1400_v52, %v194_v35 }
  0x85   :  { %832 = vperm.xlu0 %1165, %v1298_v20   ;;  %v1421_v61 = vmul.f32 %v150_v49, %v54_v55  ;;  %v1423_v62 = vmul.f32 %v149_v48, %v58_v56  ;;  %v199_v48 = vrot.slane %v1405_v53, %v194_v35 }
  0x88   :  { %533 = vperm.xlu1 %1154, %v1324_v29  }
  0x89   :  { %776 = vrot.lane.b32.xlu0 %v1302_v21, %s1225_s29 }
  0x8a   :  { %1168 = vset.pattern.permute.xlu0 %v1919_v51 }
  0x8c   :  { %v104_v54 = vpop.permute.xlu1 %103  ;;  %537 = vperm.xlu1 %1154, %v1317_v26  }
  0x8d   :  { %885 = vperm.xlu0 %1168, %v1308_v23   ;;  %v118_v22 = vmul.f32 %v104_v54, %v1417_v59  ;;  %v119_v25 = vmul.f32 %v104_v54, %v1419_v60 }
  0x90   :  { %v108_v57 = vpop.permute.xlu1 %107  ;;  %598 = vrot.lane.b32.xlu1 %v1302_v21, %s1218_s27 }
  0x91   :  { %1169 = vset.pattern.permute.xlu0 %v1921_v58  ;;  %1157 = vset.pattern.permute.xlu1 %v1219_v37  ;;  %v120_v2 = vmul.f32 %v108_v57, %v1417_v59  ;;  %v121_v4 = vmul.f32 %v108_v57, %v1419_v60 }
  0x92   :  { %921 = vperm.xlu0 %1169, %v1298_v20  }
  0x94   :  { %v116_v63 = vpop.permute.xlu1 %115  ;;  %618 = vperm.xlu1 %1157, %v1308_v23   ;;  %v159_v0 = vpop.permute.xlu0 %158 }
  0x95   :  { %v171_v5 = vmul.f32 %v159_v0, %v1421_v61  ;;  %v172_v7 = vmul.f32 %v159_v0, %v1423_v62  ;;  %v124_v43 = vmul.f32 %v116_v63, %v1417_v59  ;;  %v125_v44 = vmul.f32 %v116_v63, %v1419_v60 }
  0x96   :  { %1170 = vset.pattern.permute.xlu0 %v1920_v3 }
  0x97   :  { %v179_v9 = vadd.f32 %v171_v5, %v120_v2  ;;  %v180_v10 = vadd.f32 %v172_v7, %v121_v4  ;;  %111 = vperm.xlu0 %1170, %v1324_v29  }
  0x98   :  { %622 = vperm.xlu1 %1157, %v1324_v29   ;;  %v186_v16 = vpop.permute.xlu0 %185 }
  0x99   :  { %v155_v19 = vpop.permute.xlu1 %154 }
  0x9a   :  { %v169_v27 = vmul.f32 %v155_v19, %v1421_v61  ;;  %v170_v28 = vmul.f32 %v155_v19, %v1423_v62 }
  0x9b   :  { %865 = vrot.lane.b32.xlu0 %v1302_v21, %s1228_s2  ;;  %v984_v21 = vrot.slane %v1447_v30, %v1281_v14 }
  0x9c   :  { %v177_v31 = vadd.f32 %v169_v27, %v118_v22  ;;  %v178_v32 = vadd.f32 %v170_v28, %v119_v25  ;;  %1158 = vset.pattern.permute.xlu1 %v1220_v38  ;;  %v204_v33 = vpop.permute.xlu0 %203 }
  0x9d   :  { %v1450_v34 = vpop.permute.xlu1 %162  ;;  %654 = vperm.xlu1 %1158, %v1298_v20  }
  0x9f   :  { %914 = vrot.lane.b32.xlu0 %v1312_v24, %s1228_s2 }
  0xa0   :  { %v216_v36 = vpop.permute.xlu0 %215 }
  0xa1   :  { %v167_v37 = vpop.permute.xlu1 %166  ;;  %1160 = vset.pattern.permute.xlu1 %v1229_v40 }
  0xa2   :  { %v175_v45 = vmul.f32 %v167_v37, %v1421_v61  ;;  %v176_v46 = vmul.f32 %v167_v37, %v1423_v62  ;;  %703 = vperm.xlu1 %1160, %v1298_v20  }
  0xa3   :  { %990 = vperm.xlu0 %1170, %v984_v21  }
  0xa4   :  { %v183_v49 = vadd.f32 %v175_v45, %v124_v43  ;;  %v184_v54 = vadd.f32 %v176_v46, %v125_v44  ;;  %v237_v55 = vpop.permute.xlu0 %236 }
  0xa5   :  { %v188_v56 = vpop.permute.xlu1 %187 }
  0xa6   :  { %v190_v57 = vsel %vm189_vm1, %v186_v16, %v188_v56  ;;  %v191_v63 = vsel %vm189_vm1, %v188_v56, %v186_v16  ;;  %707 = vperm.xlu1 %1160, %v1308_v23  }
  0xa7   :  { %v1472_v0 = vmul.f32 %v195_v47, %v191_v63  ;;  %v1474_v2 = vmul.f32 %v199_v48, %v190_v57  ;;  %1174 = vset.pattern.permute.xlu0 %v1229_v40 }
  0xa8   :  { %v248_v4 = vpop.permute.xlu0 %247  ;;  %711 = vperm.xlu0 %1174, %v1324_v29  }
  0xa9   :  { %v224_v5 = vmul.f32 %v216_v36, %v1472_v0  ;;  %v225_v7 = vmul.f32 %v216_v36, %v1474_v2  ;;  %v208_v12 = vpop.permute.xlu1 %207  ;;  %v218_v19 = vmul.f32 %v204_v33, %v1472_v0  ;;  %v219_v16 = vmul.f32 %v204_v33, %v1474_v2 }
  0xaa   :  { %v220_v22 = vmul.f32 %v208_v12, %v1472_v0  ;;  %v221_v25 = vmul.f32 %v208_v12, %v1474_v2  ;;  %647 = vrot.lane.b32.xlu1 %v1312_v24, %s1218_s27 }
  0xab   :  { %v232_v27 = vadd.f32 %v224_v5, %v183_v49  ;;  %v233_v28 = vadd.f32 %v225_v7, %v184_v54  ;;  %1162 = vset.pattern.permute.xlu1 %v1918_v39  ;;  %v226_v35 = vadd.f32 %v218_v19, %v177_v31  ;;  %v227_v21 = vadd.f32 %v219_v16, %v178_v32 }
  0xac   :  { %v228_v37 = vadd.f32 %v220_v22, %v179_v9  ;;  %v229_v36 = vadd.f32 %v221_v25, %v180_v10  ;;  %v275_v43 = vpop.permute.xlu0 %274  ;;  %1177 = vset.pattern.permute.xlu0 %v1918_v39  ;;  %v1502_v10 = vrot.slane %v1429_v1, %v1284_v15 }
  0xad   :  { %v1488_v44 = vpop.permute.xlu1 %211  ;;  %755 = vperm.xlu0 %1177, %v1317_v26  }
  0xae   :  { %747 = vperm.xlu1 %1162, %v1308_v23   ;;  %v975_v54 = vcombine.high %v1502_v10, %v1502_v10 }
  0xb0   :  { %v293_v33 = vpop.permute.xlu0 %292  ;;  %v1004_v12 = vrot.slane %v975_v54, %v1281_v14 }
  0xb1   :  { %v235_v45 = vpop.permute.xlu1 %234  ;;  %1179 = vset.pattern.permute.xlu0 %v1916_v50 }
  0xb2   :  { %v238_v46 = vsel %vm189_vm1, %v235_v45, %v237_v55  ;;  %v239_v9 = vsel %vm189_vm1, %v237_v55, %v235_v45  ;;  %685 = vrot.lane.b32.xlu1 %v1292_v18, %s1222_s28  ;;  %840 = vperm.xlu0 %1179, %v1324_v29  }
  0xb3   :  { %v1504_v31 = vmul.f32 %v239_v9, %v195_v47  ;;  %v1506_v32 = vmul.f32 %v238_v46, %v199_v48  ;;  %1163 = vset.pattern.permute.xlu1 %v1917_v42 }
  0xb4   :  { %v305_v49 = vpop.permute.xlu0 %304 }
  0xb5   :  { %v244_v55 = vpop.permute.xlu1 %243  ;;  %v260_v56 = vmul.f32 %v248_v4, %v1504_v31  ;;  %v261_v57 = vmul.f32 %v248_v4, %v1506_v32  ;;  %v283_v4 = vsub.s32 2, %v1262_v6 }
  0xb6   :  { %v258_v63 = vmul.f32 %v244_v55, %v1504_v31  ;;  %v259_v15 = vmul.f32 %v244_v55, %v1506_v32  ;;  %792 = vperm.xlu1 %1163, %v1298_v20   ;;  %1182 = vset.pattern.permute.xlu0 %v1919_v51 }
  0xb7   :  { %v268_v1 = vadd.f32 %v260_v56, %v228_v37  ;;  %v269_v47 = vadd.f32 %v261_v57, %v229_v36  ;;  %893 = vperm.xlu0 %1182, %v1317_v26   ;;  %v288_v37 = vrot.slane %v1405_v53, %v283_v4 }
  0xb8   :  { %v266_v48 = vadd.f32 %v258_v63, %v226_v35  ;;  %v267_v5 = vadd.f32 %v259_v15, %v227_v21  ;;  %v326_v7 = vpop.permute.xlu0 %325  ;;  %v284_v21 = vrot.slane %v1400_v52, %v283_v4 }
  0xb9   :  { %v1519_v19 = vpop.permute.xlu1 %251 }
  0xba   :  { %734 = vrot.lane.b32.xlu1 %v1288_v17, %s1222_s28 }
  0xbb   :  { %1166 = vset.pattern.permute.xlu1 %v1916_v50  ;;  %1184 = vset.pattern.permute.xlu0 %v1920_v3 }
  0xbc   :  { %v337_v16 = vpop.permute.xlu0 %336  ;;  %1010 = vperm.xlu0 %1184, %v1004_v12  }
  0xbd   :  { %v256_v22 = vpop.permute.xlu1 %255 }
  0xbe   :  { %v264_v25 = vmul.f32 %v256_v22, %v1504_v31  ;;  %v265_v35 = vmul.f32 %v256_v22, %v1506_v32  ;;  %736 = vrot.lane.b32.xlu1 %v1312_v24, %s1222_s28 }
  0xc0   :  { %v272_v36 = vadd.f32 %v264_v25, %v232_v27  ;;  %v273_v45 = vadd.f32 %v265_v35, %v233_v28  ;;  %v1533_v46 = vpop.permute.xlu0 %363 }
  0xc1   :  { %v277_v9 = vpop.permute.xlu1 %276 }
  0xc2   :  { %v279_v54 = vsel %vm278_vm2, %v275_v43, %v277_v9  ;;  %v280_v55 = vsel %vm278_vm2, %v277_v9, %v275_v43  ;;  %836 = vperm.xlu1 %1166, %v1308_v23  }
  0xc3   :  { %v1540_v56 = vmul.f32 %v284_v21, %v280_v55  ;;  %v1542_v57 = vmul.f32 %v288_v37, %v279_v54 }
  0xc4   :  { %v1544_v63 = vpop.permute.xlu0 %381 }
  0xc5   :  { %v297_v15 = vpop.permute.xlu1 %296  ;;  %v307_v27 = vmul.f32 %v293_v33, %v1540_v56  ;;  %v308_v28 = vmul.f32 %v293_v33, %v1542_v57  ;;  %v313_v12 = vmul.f32 %v305_v49, %v1540_v56  ;;  %v314_v4 = vmul.f32 %v305_v49, %v1542_v57 }
  0xc6   :  { %v309_v22 = vmul.f32 %v297_v15, %v1540_v56  ;;  %v310_v43 = vmul.f32 %v297_v15, %v1542_v57  ;;  %774 = vrot.lane.b32.xlu1 %v1292_v18, %s1225_s29 }
  0xc7   :  { %1167 = vset.pattern.permute.xlu1 %v1919_v51  ;;  %v315_v25 = vadd.f32 %v307_v27, %v266_v48  ;;  %v316_v35 = vadd.f32 %v308_v28, %v267_v5  ;;  %v321_v9 = vadd.f32 %v313_v12, %v272_v36  ;;  %v322_v54 = vadd.f32 %v314_v4, %v273_v45 }
  0xc8   :  { %v317_v55 = vadd.f32 %v309_v22, %v268_v1  ;;  %v318_v50 = vadd.f32 %v310_v43, %v269_v47  ;;  %v394_v33 = vpop.permute.xlu0 %393 }
  0xc9   :  { %v1555_v42 = vpop.permute.xlu1 %300 }
  0xca   :  { %881 = vperm.xlu1 %1167, %v1298_v20  }
  0xcc   :  { %v1558_v49 = vpop.permute.xlu0 %414 }
  0xcd   :  { %v324_v39 = vpop.permute.xlu1 %323 }
  0xce   :  { %v327_v15 = vsel %vm278_vm2, %v324_v39, %v326_v7  ;;  %v328_v51 = vsel %vm278_vm2, %v326_v7, %v324_v39  ;;  %823 = vrot.lane.b32.xlu1 %v1288_v17, %s1225_s29 }
  0xcf   :  { %v329_v48 = vmul.f32 %v328_v51, %v284_v21  ;;  %v330_v1 = vmul.f32 %v327_v15, %v288_v37  ;;  %1171 = vset.pattern.permute.xlu1 %v1921_v58 }
  0xd0   :  { %v1567_v47 = vpop.permute.xlu0 %425 }
  0xd1   :  { %v333_v5 = vpop.permute.xlu1 %332  ;;  %v349_v20 = vmul.f32 %v337_v16, %v329_v48  ;;  %v350_v36 = vmul.f32 %v337_v16, %v330_v1  ;;  %v372_v16 = vsub.s32 3, %v1262_v6 }
  0xd2   :  { %v347_v45 = vmul.f32 %v333_v5, %v329_v48  ;;  %v348_v27 = vmul.f32 %v333_v5, %v330_v1  ;;  %825 = vrot.lane.b32.xlu1 %v1312_v24, %s1225_s29 }
  0xd3   :  { %v357_v28 = vadd.f32 %v349_v20, %v317_v55  ;;  %v358_v12 = vadd.f32 %v350_v36, %v318_v50  ;;  %v373_v24 = vrot.slane %v1400_v52, %v372_v16  ;;  %v377_v50 = vrot.slane %v1405_v53, %v372_v16 }
  0xd4   :  { %v355_v39 = vadd.f32 %v347_v45, %v315_v25  ;;  %v356_v7 = vadd.f32 %v348_v27, %v316_v35 }
  0xd5   :  { %v341_v4 = vpop.permute.xlu1 %340  ;;  %v1571_v22 = vpop.permute.xlu0 %453 }
  0xd6   :  { %v1573_v51 = vmul.f32 %v341_v4, %v329_v48  ;;  %v1575_v21 = vmul.f32 %v341_v4, %v330_v1  ;;  %925 = vperm.xlu1 %1171, %v1308_v23  }
  0xd9   :  { %v345_v37 = vpop.permute.xlu1 %344  ;;  %v466_v43 = vpop.permute.xlu0 %465 }
  0xda   :  { %v353_v15 = vmul.f32 %v345_v37, %v329_v48  ;;  %v354_v5 = vmul.f32 %v345_v37, %v330_v1  ;;  %863 = vrot.lane.b32.xlu1 %v1292_v18, %s1228_s2  ;;  %v980_v18 = vrot.slane %v1502_v10, %v1281_v14 }
  0xdb   :  { %1172 = vset.pattern.permute.xlu1 %v1920_v3 }
  0xdc   :  { %v361_v25 = vadd.f32 %v353_v15, %v321_v9  ;;  %v362_v35 = vadd.f32 %v354_v5, %v322_v54 }
  0xdd   :  { %v366_v23 = vpop.permute.xlu1 %365 }
  0xde   :  { %v368_v55 = vsel %vm367_vm3, %v1533_v46, %v366_v23  ;;  %v369_v48 = vsel %vm367_vm3, %v366_v23, %v1533_v46  ;;  %912 = vrot.lane.b32.xlu1 %v1288_v17, %s1228_s2  ;;  %v1595_v1 = vpop.permute.xlu0 %529 }
  0xdf   :  { %v378_v20 = vmul.f32 %v373_v24, %v369_v48  ;;  %v379_v9 = vmul.f32 %v377_v50, %v368_v55 }
  0xe1   :  { %v386_v54 = vpop.permute.xlu1 %385  ;;  %v396_v36 = vmul.f32 %v1544_v63, %v378_v20  ;;  %v397_v45 = vmul.f32 %v1544_v63, %v379_v9  ;;  %v402_v27 = vmul.f32 %v394_v33, %v378_v20  ;;  %v403_v37 = vmul.f32 %v394_v33, %v379_v9 }
  0xe2   :  { %v398_v4 = vmul.f32 %v386_v54, %v378_v20  ;;  %v399_v16 = vmul.f32 %v386_v54, %v379_v9  ;;  %986 = vperm.xlu1 %1172, %v980_v18   ;;  %v1599_v46 = vpop.permute.xlu0 %596 }
  0xe3   :  { %v404_v17 = vadd.f32 %v396_v36, %v355_v39  ;;  %v405_v15 = vadd.f32 %v397_v45, %v356_v7  ;;  %v410_v5 = vadd.f32 %v402_v27, %v361_v25  ;;  %v411_v3 = vadd.f32 %v403_v37, %v362_v35 }
  0xe4   :  { %v406_v10 = vadd.f32 %v398_v4, %v357_v28  ;;  %v407_v23 = vadd.f32 %v399_v16, %v358_v12  ;;  %v1927_v37 = vmov 13  }
  0xe5   :  { %v390_v48 = vpop.permute.xlu1 %389 }
  0xe6   :  { %v1601_v55 = vmul.f32 %v390_v48, %v378_v20  ;;  %v1603_v58 = vmul.f32 %v390_v48, %v379_v9  ;;  %1173 = vset.pattern.permute.xlu1 %v1220_v38  ;;  %v1606_v63 = vpop.permute.xlu0 %614  ;;  %v471_v20 = vmul.f32 %v466_v43, %v1272_v11 }
  0xe7   :  { %662 = vperm.xlu1 %1173, %v1324_v29  }
  0xe8   :  { %v506_v4 = vrot.slane %v471_v20, %v1278_v13 }
  0xe9   :  { %v413_v18 = vpop.permute.xlu1 %412 }
  0xea   :  { %v416_v33 = vsel %vm367_vm3, %v413_v18, %v1558_v49  ;;  %v417_v28 = vsel %vm367_vm3, %v1558_v49, %v413_v18  ;;  %v1615_v12 = vpop.permute.xlu0 %626 }
  0xeb   :  { %v418_v39 = vmul.f32 %v417_v28, %v373_v24  ;;  %v419_v7 = vmul.f32 %v416_v33, %v377_v50  ;;  %666 = vperm.xlu1 %1173, %v1317_v26   ;;  %v1928_v33 = vmov 14  }
  0xed   :  { %v422_v38 = vpop.permute.xlu1 %421  ;;  %v438_v25 = vmul.f32 %v1567_v47, %v418_v39  ;;  %v439_v35 = vmul.f32 %v1567_v47, %v419_v7 }
  0xee   :  { %v436_v9 = vmul.f32 %v422_v38, %v418_v39  ;;  %v437_v54 = vmul.f32 %v422_v38, %v419_v7 }
  0xef   :  { %1175 = vset.pattern.permute.xlu1 %v1229_v40  ;;  %v1622_v36 = vpop.permute.xlu0 %658  ;;  %v446_v49 = vadd.f32 %v438_v25, %v406_v10  ;;  %v447_v45 = vadd.f32 %v439_v35, %v407_v23  ;;  %v507_v10 = vcombine.high %v506_v4, %v506_v4 }
  0xf0   :  { %v444_v27 = vadd.f32 %v436_v9, %v404_v17  ;;  %v445_v24 = vadd.f32 %v437_v54, %v405_v15  ;;  %715 = vperm.xlu1 %1175, %v1317_v26   ;;  %v468_v9 = vmul.f32 %v1571_v22, %v1272_v11 }
  0xf1   :  { %v430_v50 = vpop.permute.xlu1 %429 }
  0xf2   :  { %v1626_v16 = vmul.f32 %v430_v50, %v418_v39  ;;  %v1628_v47 = vmul.f32 %v430_v50, %v419_v7  ;;  %v482_v50 = vrot.slane %v468_v9, %v1278_v13 }
  0xf3   :  { %v1630_v43 = vpop.permute.xlu0 %645 }
  0xf4   :  { %1176 = vset.pattern.permute.xlu1 %v1927_v37  ;;  %v1930_v37 = vmov 15  }
  0xf5   :  { %751 = vperm.xlu1 %1176, %v1324_v29   ;;  %v434_v40 = vpop.permute.xlu1 %433 }
  0xf6   :  { %v442_v23 = vmul.f32 %v434_v40, %v418_v39  ;;  %v443_v17 = vmul.f32 %v434_v40, %v419_v7 }
  0xf7   :  { %v1634_v15 = vpop.permute.xlu0 %743 }
  0xf8   :  { %v450_v48 = vadd.f32 %v442_v23, %v410_v5  ;;  %v451_v18 = vadd.f32 %v443_v17, %v411_v3  ;;  %v516_v17 = vadd.f32 %v482_v50, %v444_v27 }
  0xf9   :  { %1178 = vset.pattern.permute.xlu1 %v1928_v33 }
  0xfa   :  { %v522_v28 = vadd.f32 %v506_v4, %v450_v48  ;;  %v523_v38 = vadd.f32 %v507_v10, %v451_v18  ;;  %800 = vperm.xlu1 %1178, %v1324_v29   ;;  %v458_v25 = vpop.permute.xlu1 %457  ;;  %v483_v10 = vcombine.high %v482_v50, %v482_v50  ;;  %v1932_v18 = vmov 16  }
  0xfb   :  { %v469_v35 = vmul.f32 %v458_v25, %v1272_v11  ;;  %v1639_v20 = vpop.permute.xlu0 %687 }
  0xfd   :  { %v490_v39 = vrot.slane %v469_v35, %v1278_v13 }
  0xfe   :  { %804 = vperm.xlu1 %1178, %v1317_v26   ;;  %v1645_v5 = vpop.permute.xlu1 %461 }
  0xff   :  { %v491_v3 = vcombine.high %v490_v39, %v490_v39  ;;  %v518_v7 = vadd.f32 %v490_v39, %v446_v49  ;;  %v1647_v54 = vpop.permute.xlu0 %796  ;;  %v541_v49 = vmul.f32 %v1595_v1, %v1267_v8  ;;  %v605_v39 = vsub.s32 5, %v1262_v6 }
 0x100   :  { %1929 = vst [vmem:[#allocation2_spill] sm:$0xff] %v1647_v54  ;;  %v1934_v1 = vmov 17  }
 0x101   :  { %v519_v4 = vadd.f32 %v491_v3, %v447_v45  ;;  %v517_v45 = vadd.f32 %v483_v10, %v445_v24  ;;  %v562_v27 = vrot.slane %v541_v49, %v1278_v13  ;;  %v1673_v24 = vrot.slane %v1400_v52, %v605_v39 }
 0x102   :  { %1180 = vset.pattern.permute.xlu1 %v1930_v37  ;;  %v1676_v10 = vrot.slane %v1405_v53, %v605_v39 }
 0x103   :  { %844 = vperm.xlu1 %1180, %v1317_v26   ;;  %v526_v40 = vpop.permute.xlu1 %525 }
 0x104   :  { %v540_v22 = vmul.f32 %v526_v40, %v1267_v8  ;;  %v1653_v23 = vpop.permute.xlu0 %832 }
 0x105   :  { %1931 = vst [vmem:[#allocation3_spill] sm:$0xff] %v1653_v23 }
 0x106   :  { %v554_v48 = vrot.slane %v540_v22, %v1278_v13  ;;  %v976_v22 = vcombine.high %v1447_v30, %v1447_v30 }
 0x107   :  { %1181 = vset.pattern.permute.xlu1 %v1932_v18  ;;  %v1659_v33 = vpop.permute.xlu1 %533 }
 0x108   :  { %v555_v25 = vcombine.high %v554_v48, %v554_v48  ;;  %v588_v35 = vadd.f32 %v554_v48, %v516_v17  ;;  %889 = vperm.xlu1 %1181, %v1324_v29   ;;  %v1662_v9 = vpop.permute.xlu0 %776  ;;  %v563_v48 = vcombine.high %v562_v27, %v562_v27 }
 0x109   :  { %1933 = vst [vmem:[#allocation4_spill] sm:$0xff] %v1662_v9 }
 0x10a   :  { %v589_v3 = vadd.f32 %v555_v25, %v517_v45 }
 0x10b   :  { %v538_v50 = vpop.permute.xlu1 %537 }
 0x10c   :  { %v543_v37 = vmul.f32 %v538_v50, %v1267_v8  ;;  %1183 = vset.pattern.permute.xlu1 %v1934_v1  ;;  %v1668_v40 = vpop.permute.xlu0 %885  ;;  %v1008_v1 = vrot.slane %v976_v22, %v1281_v14 }
 0x10d   :  { %1935 = vst [vmem:[#allocation5_spill] sm:$0xff] %v1668_v40  ;;  %929 = vperm.xlu1 %1183, %v1324_v29  }
 0x10e   :  { %v578_v17 = vrot.slane %v543_v37, %v1278_v13 }
 0x10f   :  { %v599_v49 = vpop.permute.xlu1 %598 }
 0x110   :  { %v579_v18 = vcombine.high %v578_v17, %v578_v17  ;;  %v594_v45 = vadd.f32 %v578_v17, %v522_v28  ;;  %v601_v29 = vsel %vm600_vm4, %v1599_v46, %v599_v49  ;;  %v602_v25 = vsel %vm600_vm4, %v599_v49, %v1599_v46 }
 0x111   :  { %v611_v39 = vmul.f32 %v1673_v24, %v601_v29  ;;  %v612_v50 = vmul.f32 %v1676_v10, %v602_v25  ;;  %933 = vperm.xlu1 %1183, %v1317_v26   ;;  %v1690_v30 = vpop.permute.xlu0 %921  ;;  %v590_v49 = vadd.f32 %v562_v27, %v518_v7  ;;  %v591_v29 = vadd.f32 %v563_v48, %v519_v4 }
 0x112   :  { %1936 = vst [vmem:[#allocation6_spill] sm:$0xff] %v1690_v30  ;;  %v595_v37 = vadd.f32 %v579_v18, %v523_v38  ;;  %v1937_v38 = vmov 0   ;;  %v174_v7 = vmul.f32 %v1450_v34, %v1423_v62  ;;  %v263_v62 = vmul.f32 %v1519_v19, %v1506_v32 }
 0x113   :  { %v629_v28 = vmul.f32 %v1606_v63, %v611_v39  ;;  %v630_v17 = vmul.f32 %v1606_v63, %v612_v50  ;;  %v619_v40 = vpop.permute.xlu1 %618  ;;  %v635_v23 = vmul.f32 %v1615_v12, %v611_v39  ;;  %v636_v46 = vmul.f32 %v1615_v12, %v612_v50 }
 0x114   :  { %v631_v54 = vmul.f32 %v619_v40, %v611_v39  ;;  %v632_v25 = vmul.f32 %v619_v40, %v612_v50  ;;  %v173_v12 = vmul.f32 %v1450_v34, %v1421_v61  ;;  %v222_v40 = vmul.f32 %v1488_v44, %v1472_v0  ;;  %v1941_v41 = vld [vmem:[#allocation5_spill] sm:$0xff] }
 0x115   :  { %v1697_v9 = vadd.f32 %v629_v28, %v588_v35  ;;  %v1699_v26 = vadd.f32 %v630_v17, %v589_v3  ;;  %1185 = vset.pattern.permute.xlu1 %v1937_v38  ;;  %v1702_v14 = vadd.f32 %v635_v23, %v594_v45  ;;  %v1704_v22 = vadd.f32 %v636_v46, %v595_v37 }
 0x116   :  { %v639_v63 = vadd.f32 %v631_v54, %v590_v49  ;;  %v640_v18 = vadd.f32 %v632_v25, %v591_v29  ;;  %1014 = vperm.xlu1 %1185, %v1008_v1   ;;  %v112_v30 = vpop.permute.xlu0 %111  ;;  %v223_v54 = vmul.f32 %v1488_v44, %v1474_v2  ;;  %v262_v61 = vmul.f32 %v1519_v19, %v1504_v31 }
 0x117   :  { %v122_v4 = vmul.f32 %v112_v30, %v1417_v59  ;;  %v123_v35 = vmul.f32 %v112_v30, %v1419_v60  ;;  %v623_v3 = vpop.permute.xlu1 %622  ;;  %v311_v60 = vmul.f32 %v1555_v42, %v1540_v56  ;;  %v312_v0 = vmul.f32 %v1555_v42, %v1542_v57 }
 0x118   :  { %v633_v27 = vmul.f32 %v623_v3, %v611_v39  ;;  %v634_v23 = vmul.f32 %v623_v3, %v612_v50  ;;  %v470_v2 = vmul.f32 %v1645_v5, %v1272_v11  ;;  %v542_v31 = vmul.f32 %v1659_v33, %v1267_v8 }
 0x119   :  { %v181_v48 = vadd.f32 %v173_v12, %v122_v4  ;;  %v182_v45 = vadd.f32 %v174_v7, %v123_v35 }
 0x11a   :  { %v498_v32 = vrot.slane %v470_v2, %v1278_v13  ;;  %v570_v28 = vrot.slane %v542_v31, %v1278_v13  ;;  %v783_v31 = vsub.s32 7, %v1262_v6 }
 0x11b   :  { %v230_v59 = vadd.f32 %v222_v40, %v181_v48  ;;  %v231_v34 = vadd.f32 %v223_v54, %v182_v45 }
 0x11c   :  { %v655_v39 = vpop.permute.xlu1 %654  ;;  %v499_v57 = vcombine.high %v498_v32, %v498_v32  ;;  %v571_v17 = vcombine.high %v570_v28, %v570_v28 }
 0x11d   :  { %v270_v44 = vadd.f32 %v262_v61, %v230_v59  ;;  %v271_v50 = vadd.f32 %v263_v62, %v231_v34 }
 0x11f   :  { %v319_v30 = vadd.f32 %v311_v60, %v270_v44  ;;  %v320_v37 = vadd.f32 %v312_v0, %v271_v50 }
 0x121   :  { %v359_v19 = vadd.f32 %v1573_v51, %v319_v30  ;;  %v360_v56 = vadd.f32 %v1575_v21, %v320_v37  ;;  %v704_v1 = vpop.permute.xlu1 %703 }
 0x123   :  { %v408_v42 = vadd.f32 %v1601_v55, %v359_v19  ;;  %v409_v11 = vadd.f32 %v1603_v58, %v360_v56  ;;  %v694_v55 = vsub.s32 6, %v1262_v6  ;;  %v788_v6 = vrot.slane %v1405_v53, %v783_v31 }
 0x125   :  { %v448_v5 = vadd.f32 %v1626_v16, %v408_v42  ;;  %v449_v8 = vadd.f32 %v1628_v47, %v409_v11  ;;  %v708_v33 = vpop.permute.xlu1 %707  ;;  %v784_v42 = vrot.slane %v1400_v52, %v783_v31 }
 0x127   :  { %v520_v46 = vadd.f32 %v498_v32, %v448_v5  ;;  %v521_v49 = vadd.f32 %v499_v57, %v449_v8 }
 0x129   :  { %v592_v29 = vadd.f32 %v570_v28, %v520_v46  ;;  %v593_v51 = vadd.f32 %v571_v17, %v521_v49  ;;  %v648_v25 = vpop.permute.xlu1 %647  ;;  %v1938_v17 = vld [vmem:[#allocation4_spill] sm:$0xff] }
 0x12a   :  { %v649_v21 = vsel %vm600_vm4, %v1630_v43, %v648_v25  ;;  %v650_v58 = vsel %vm600_vm4, %v648_v25, %v1630_v43 }
 0x12b   :  { %v1743_v16 = vadd.f32 %v633_v27, %v592_v29  ;;  %v1745_v47 = vadd.f32 %v634_v23, %v593_v51  ;;  %v1748_v38 = vmul.f32 %v649_v21, %v1673_v24  ;;  %v1751_v12 = vmul.f32 %v650_v58, %v1676_v10  ;;  %v1939_v51 = vld [vmem:[#allocation2_spill] sm:$0xff] }
 0x12c   :  { %v695_v27 = vrot.slane %v1400_v52, %v694_v55  ;;  %v699_v24 = vrot.slane %v1405_v53, %v694_v55 }
 0x12d   :  { %v669_v7 = vmul.f32 %v655_v39, %v1748_v38  ;;  %v670_v4 = vmul.f32 %v655_v39, %v1751_v12  ;;  %v671_v35 = vmul.f32 %v1622_v36, %v1748_v38  ;;  %v672_v43 = vmul.f32 %v1622_v36, %v1751_v12  ;;  %v748_v3 = vpop.permute.xlu1 %747 }
 0x12f   :  { %v677_v10 = vadd.f32 %v669_v7, %v1697_v9  ;;  %v678_v23 = vadd.f32 %v670_v4, %v1699_v26  ;;  %v679_v40 = vadd.f32 %v671_v35, %v639_v63  ;;  %v680_v54 = vadd.f32 %v672_v43, %v640_v18 }
 0x131   :  { %v686_v48 = vpop.permute.xlu1 %685 }
 0x132   :  { %v690_v45 = vsel %vm689_vm5, %v686_v48, %v1639_v20  ;;  %v691_v36 = vsel %vm689_vm5, %v1639_v20, %v686_v48 }
 0x133   :  { %v1770_v61 = vmul.f32 %v695_v27, %v690_v45  ;;  %v1772_v62 = vmul.f32 %v699_v24, %v691_v36  ;;  %v1940_v36 = vld [vmem:[#allocation3_spill] sm:$0xff] }
 0x135   :  { %v718_v59 = vmul.f32 %v704_v1, %v1770_v61  ;;  %v719_v9 = vmul.f32 %v704_v1, %v1772_v62  ;;  %v720_v26 = vmul.f32 %v708_v33, %v1770_v61  ;;  %v721_v63 = vmul.f32 %v708_v33, %v1772_v62  ;;  %v793_v18 = vpop.permute.xlu1 %792 }
 0x137   :  { %v726_v34 = vadd.f32 %v718_v59, %v677_v10  ;;  %v727_v60 = vadd.f32 %v719_v9, %v678_v23  ;;  %v728_v39 = vadd.f32 %v720_v26, %v679_v40  ;;  %v729_v0 = vadd.f32 %v721_v63, %v680_v54  ;;  %v866_v10 = vpop.permute.xlu0 %865 }
 0x139   :  { %v735_v2 = vpop.permute.xlu1 %734 }
 0x13d   :  { %v737_v44 = vpop.permute.xlu1 %736 }
 0x13e   :  { %v738_v20 = vsel %vm689_vm5, %v735_v2, %v737_v44  ;;  %v739_v50 = vsel %vm689_vm5, %v737_v44, %v735_v2 }
 0x13f   :  { %v1783_v30 = vmul.f32 %v738_v20, %v695_v27  ;;  %v1785_v37 = vmul.f32 %v739_v50, %v699_v24 }
 0x141   :  { %v758_v32 = vmul.f32 %v1634_v15, %v1783_v30  ;;  %v759_v19 = vmul.f32 %v1634_v15, %v1785_v37  ;;  %v760_v56 = vmul.f32 %v748_v3, %v1783_v30  ;;  %v761_v1 = vmul.f32 %v748_v3, %v1785_v37  ;;  %v837_v28 = vpop.permute.xlu1 %836 }
 0x143   :  { %v768_v11 = vadd.f32 %v760_v56, %v728_v39  ;;  %v769_v57 = vadd.f32 %v761_v1, %v729_v0  ;;  %v766_v5 = vadd.f32 %v758_v32, %v726_v34  ;;  %v767_v8 = vadd.f32 %v759_v19, %v727_v60  ;;  %v1105_v34 = vld [vmem:[%s1912_s3 + $0x18] ss:$0 sm:$0xff]  ;;  %v915_v0 = vpop.permute.xlu0 %914 }
 0x145   :  { %v775_v33 = vpop.permute.xlu1 %774 }
 0x146   :  { %v779_v15 = vsel %vm778_vm6, %v775_v33, %v1938_v17  ;;  %v780_v46 = vsel %vm778_vm6, %v1938_v17, %v775_v33 }
 0x147   :  { %v1802_v49 = vmul.f32 %v784_v42, %v779_v15  ;;  %v1804_v29 = vmul.f32 %v788_v6, %v780_v46 }
 0x149   :  { %v807_v52 = vmul.f32 %v793_v18, %v1802_v49  ;;  %v808_v53 = vmul.f32 %v793_v18, %v1804_v29  ;;  %v809_v25 = vmul.f32 %v1939_v51, %v1802_v49  ;;  %v810_v21 = vmul.f32 %v1939_v51, %v1804_v29  ;;  %v882_v58 = vpop.permute.xlu1 %881  ;;  %v1104_v18 = vld [vmem:[%s1912_s3 + $0x10] ss:$0 sm:$0xff]  ;;  %v1942_v51 = vld [vmem:[#allocation6_spill] sm:$0xff] }
 0x14b   :  { %v817_v55 = vadd.f32 %v809_v25, %v768_v11  ;;  %v818_v7 = vadd.f32 %v810_v21, %v769_v57  ;;  %v815_v4 = vadd.f32 %v807_v52, %v766_v5  ;;  %v816_v35 = vadd.f32 %v808_v53, %v767_v8  ;;  %v991_v11 = vpop.permute.xlu0 %990 }
 0x14d   :  { %v824_v43 = vpop.permute.xlu1 %823 }
 0x151   :  { %v826_v3 = vpop.permute.xlu1 %825 }
 0x152   :  { %v827_v27 = vsel %vm778_vm6, %v824_v43, %v826_v3  ;;  %v828_v24 = vsel %vm778_vm6, %v826_v3, %v824_v43 }
 0x153   :  { %v1816_v23 = vmul.f32 %v827_v27, %v784_v42  ;;  %v1818_v40 = vmul.f32 %v828_v24, %v788_v6 }
 0x155   :  { %v849_v54 = vmul.f32 %v837_v28, %v1816_v23  ;;  %v850_v48 = vmul.f32 %v837_v28, %v1818_v40  ;;  %v926_v45 = vpop.permute.xlu1 %925  ;;  %v847_v59 = vmul.f32 %v1940_v36, %v1816_v23  ;;  %v848_v9 = vmul.f32 %v1940_v36, %v1818_v40 }
 0x157   :  { %v857_v26 = vadd.f32 %v849_v54, %v817_v55  ;;  %v858_v63 = vadd.f32 %v850_v48, %v818_v7  ;;  %v855_v60 = vadd.f32 %v847_v59, %v815_v4  ;;  %v856_v39 = vadd.f32 %v848_v9, %v816_v35  ;;  %v712_v35 = vpop.permute.xlu0 %711 }
 0x158   :  { %v723_v36 = vmul.f32 %v712_v35, %v1772_v62 }
 0x159   :  { %v864_v2 = vpop.permute.xlu1 %863 }
 0x15a   :  { %v868_v44 = vsel %vm867_vm7, %v864_v2, %v866_v10  ;;  %v869_v20 = vsel %vm867_vm7, %v866_v10, %v864_v2 }
 0x15b   :  { %v1833_v50 = vmul.f32 %v1104_v18, %v868_v44  ;;  %v1835_v31 = vmul.f32 %v1105_v34, %v869_v20  ;;  %v756_v2 = vpop.permute.xlu0 %755 }
 0x15d   :  { %v898_v32 = vmul.f32 %v1941_v41, %v1833_v50  ;;  %v899_v19 = vmul.f32 %v1941_v41, %v1835_v31  ;;  %v913_v56 = vpop.permute.xlu1 %912  ;;  %v896_v42 = vmul.f32 %v882_v58, %v1833_v50  ;;  %v897_v6 = vmul.f32 %v882_v58, %v1835_v31 }
 0x15e   :  { %v916_v1 = vsel %vm867_vm7, %v913_v56, %v915_v0  ;;  %v917_v28 = vsel %vm867_vm7, %v915_v0, %v913_v56  ;;  %v764_v41 = vmul.f32 %v756_v2, %v1783_v30 }
 0x15f   :  { %v906_v57 = vadd.f32 %v898_v32, %v857_v26  ;;  %v907_v5 = vadd.f32 %v899_v19, %v858_v63  ;;  %v1843_v8 = vmul.f32 %v1104_v18, %v916_v1  ;;  %v1845_v33 = vmul.f32 %v1105_v34, %v917_v28 }
 0x160   :  { %v904_v17 = vadd.f32 %v896_v42, %v855_v60  ;;  %v905_v15 = vadd.f32 %v897_v6, %v856_v39 }
 0x161   :  { %v938_v46 = vmul.f32 %v926_v45, %v1843_v8  ;;  %v939_v52 = vmul.f32 %v926_v45, %v1845_v33  ;;  %v987_v53 = vpop.permute.xlu1 %986  ;;  %v936_v25 = vmul.f32 %v1942_v51, %v1843_v8  ;;  %v937_v21 = vmul.f32 %v1942_v51, %v1845_v33 }
 0x162   :  { %v722_v45 = vmul.f32 %v712_v35, %v1770_v61 }
 0x163   :  { %v946_v58 = vadd.f32 %v938_v46, %v906_v57  ;;  %v947_v55 = vadd.f32 %v939_v52, %v907_v5  ;;  %v944_v7 = vadd.f32 %v936_v25, %v904_v17  ;;  %v945_v4 = vadd.f32 %v937_v21, %v905_v15 }
 0x165   :  { %v995_v43 = vadd.f32 %v991_v11, %v946_v58  ;;  %v996_v3 = vadd.f32 %v991_v11, %v947_v55  ;;  %v993_v27 = vadd.f32 %v987_v53, %v944_v7  ;;  %v994_v24 = vadd.f32 %v987_v53, %v945_v4  ;;  %v841_v58 = vpop.permute.xlu0 %840 }
 0x166   :  { %v663_v10 = vpop.permute.xlu1 %662  ;;  %v851_v35 = vmul.f32 %v841_v58, %v1816_v23 }
 0x167   :  { %1186 = vtanh.f32 %v995_v43  ;;  %v673_v54 = vmul.f32 %v663_v10, %v1748_v38  ;;  %v674_v48 = vmul.f32 %v663_v10, %v1751_v12  ;;  %v852_v43 = vmul.f32 %v841_v58, %v1818_v40 }
 0x168   :  { %1188 = vtanh.f32 %v996_v3 }
 0x169   :  { %1190 = vtanh.f32 %v993_v27  ;;  %v681_v59 = vadd.f32 %v673_v54, %v1743_v16  ;;  %v682_v9 = vadd.f32 %v674_v48, %v1745_v47 }
 0x16a   :  { %1192 = vtanh.f32 %v994_v24  ;;  %v667_v26 = vpop.permute.xlu1 %666 }
 0x16b   :  { %v675_v63 = vmul.f32 %v667_v26, %v1748_v38  ;;  %v676_v18 = vmul.f32 %v667_v26, %v1751_v12  ;;  %v730_v34 = vadd.f32 %v722_v45, %v681_v59  ;;  %v731_v60 = vadd.f32 %v723_v36, %v682_v9 }
 0x16c   :  { %v765_v38 = vmul.f32 %v756_v2, %v1785_v37 }
 0x16d   :  { %v683_v39 = vadd.f32 %v675_v63, %v1702_v14  ;;  %v684_v0 = vadd.f32 %v676_v18, %v1704_v22  ;;  %v894_v18 = vpop.permute.xlu0 %893 }
 0x16f   :  { %v716_v44 = vpop.permute.xlu1 %715 }
 0x170   :  { %v724_v20 = vmul.f32 %v716_v44, %v1770_v61  ;;  %v725_v16 = vmul.f32 %v716_v44, %v1772_v62 }
 0x171   :  { %v1187_v47 = vpop.eup %1186 }
 0x172   :  { %v1189_v32 = vpop.eup %1188  ;;  %v732_v12 = vadd.f32 %v724_v20, %v683_v39  ;;  %v733_v19 = vadd.f32 %v725_v16, %v684_v0  ;;  %v1081_v56 = vsel %vm1079_vm8, %v1187_v47, 0.0  ;;  %v1049_v1 = vmul.f32 1.442695, %v1187_v47 }
 0x173   :  { %v1191_v14 = vpop.eup %1190  ;;  %v1084_v22 = vsel %vm1079_vm8, %v1189_v32, 0.0  ;;  %v1051_v28 = vmul.f32 1.442695, %v1189_v32 }
 0x174   :  { %v1193_v42 = vpop.eup %1192  ;;  %v1045_v6 = vmul.f32 1.442695, %v1191_v14  ;;  %v752_v61 = vpop.permute.xlu1 %751  ;;  %v1080_v62 = vsel %vm1079_vm8, %v1191_v14, 0.0  ;;  %v772_v11 = vadd.f32 %v764_v41, %v732_v12  ;;  %v773_v57 = vadd.f32 %v765_v38, %v733_v19 }
 0x175   :  { %v1047_v5 = vmul.f32 1.442695, %v1193_v42  ;;  %v762_v17 = vmul.f32 %v752_v61, %v1783_v30  ;;  %v763_v15 = vmul.f32 %v752_v61, %v1785_v37  ;;  %v1082_v46 = vadd.f32 %v1081_v56, %v1080_v62 }
 0x176   :  { %1194 = vpow2.f32 %v1045_v6  ;;  %v1083_v52 = vsel %vm1079_vm8, %v1193_v42, 0.0 }
 0x177   :  { %1196 = vpow2.f32 %v1047_v5  ;;  %v770_v53 = vadd.f32 %v762_v17, %v730_v34  ;;  %v771_v51 = vadd.f32 %v763_v15, %v731_v60  ;;  %v1085_v25 = vadd.f32 %v1084_v22, %v1083_v52  ;;  %v1011_v22 = vpop.permute.xlu0 %1010  ;;  %v23_v5 = vld [vmem:[%s1910_s0 + $0x8] sm:$0xf] }
 0x178   :  { %v1086_v21 = vsel %vm1079_vm8, %v1082_v46, 0.0  ;;  %1198 = vpow2.f32 %v1049_v1 }
 0x179   :  { %v1087_v55 = vsel %vm1079_vm8, %v1085_v25, 0.0  ;;  %v801_v7 = vpop.permute.xlu1 %800  ;;  %1200 = vpow2.f32 %v1051_v28 }
 0x17a   :  { %v1088_v4 = vadd.f32 %v1087_v55, %v1086_v21  ;;  %v811_v30 = vmul.f32 %v801_v7, %v1802_v49  ;;  %v812_v37 = vmul.f32 %v801_v7, %v1804_v29 }
 0x17c   :  { %1089 = vadd.xlane.f32.xlu1 %v1088_v4  ;;  %v819_v3 = vadd.f32 %v811_v30, %v770_v53  ;;  %v820_v27 = vadd.f32 %v812_v37, %v771_v51 }
 0x17d   :  { %v805_v24 = vpop.permute.xlu1 %804 }
 0x17e   :  { %v813_v10 = vmul.f32 %v805_v24, %v1802_v49  ;;  %v814_v54 = vmul.f32 %v805_v24, %v1804_v29  ;;  %v859_v48 = vadd.f32 %v851_v35, %v819_v3  ;;  %v860_v45 = vadd.f32 %v852_v43, %v820_v27 }
 0x17f   :  { %v902_v49 = vmul.f32 %v894_v18, %v1833_v50  ;;  %v903_v29 = vmul.f32 %v894_v18, %v1835_v31 }
 0x180   :  { %v1195_v36 = vpop.eup %1194  ;;  %v821_v59 = vadd.f32 %v813_v10, %v772_v11  ;;  %v822_v9 = vadd.f32 %v814_v54, %v773_v57 }
 0x181   :  { %v1197_v26 = vpop.eup %1196 }
 0x182   :  { %v1199_v63 = vpop.eup %1198  ;;  %v845_v34 = vpop.permute.xlu1 %844  ;;  %v1057_v60 = vcombine.low %v1195_v36, %v1197_v26 }
 0x183   :  { %v1201_v39 = vpop.eup %1200  ;;  %v853_v0 = vmul.f32 %v845_v34, %v1816_v23  ;;  %v854_v2 = vmul.f32 %v845_v34, %v1818_v40 }
 0x184   :  { %v1065_v44 = vcombine.low %v1199_v63, %v1201_v39  ;;  %v1064_v53 = vrot.slane %v1057_v60, %v1278_v13 }
 0x185   :  { %v861_v20 = vadd.f32 %v853_v0, %v821_v59  ;;  %v862_v16 = vadd.f32 %v854_v2, %v822_v9 }
 0x186   :  { %v1072_v55 = vrot.slane %v1065_v44, %v1278_v13 }
 0x187   :  { %v890_v47 = vpop.permute.xlu1 %889  ;;  %v910_v41 = vadd.f32 %v902_v49, %v861_v20  ;;  %v911_v32 = vadd.f32 %v903_v29, %v862_v16 }
 0x188   :  { %v900_v38 = vmul.f32 %v890_v47, %v1833_v50  ;;  %v901_v12 = vmul.f32 %v890_v47, %v1835_v31 }
 0x18a   :  { %v908_v19 = vadd.f32 %v900_v38, %v859_v48  ;;  %v909_v56 = vadd.f32 %v901_v12, %v860_v45 }
 0x18c   :  { %v930_v14 = vpop.permute.xlu1 %929 }
 0x18d   :  { %v940_v23 = vmul.f32 %v930_v14, %v1843_v8  ;;  %v941_v40 = vmul.f32 %v930_v14, %v1845_v33 }
 0x18f   :  { %v948_v1 = vadd.f32 %v940_v23, %v908_v19  ;;  %v949_v28 = vadd.f32 %v941_v40, %v909_v56 }
 0x190   :  { %v934_v42 = vpop.permute.xlu1 %933 }
 0x191   :  { %v942_v6 = vmul.f32 %v934_v42, %v1843_v8  ;;  %v943_v61 = vmul.f32 %v934_v42, %v1845_v33  ;;  %v1017_v62 = vadd.f32 %v1011_v22, %v948_v1  ;;  %v1018_v11 = vadd.f32 %v1011_v22, %v949_v28  ;;  %v24_v33 = vld [vmem:[%s1910_s0 + $0xc] sm:$0xf] }
 0x193   :  { %v1025_v50 = vcombine.low %v1017_v62, %v1018_v11  ;;  %v950_v57 = vadd.f32 %v942_v6, %v910_v41  ;;  %v951_v31 = vadd.f32 %v943_v61, %v911_v32 }
 0x195   :  { %v1032_v17 = vrot.slane %v1025_v50, %v1278_v13  ;;  %v1015_v15 = vpop.permute.xlu1 %1014 }
 0x196   :  { %v1019_v46 = vadd.f32 %v1015_v15, %v950_v57  ;;  %v1020_v52 = vadd.f32 %v1015_v15, %v951_v31 }
 0x197   :  { %v1043_v51 = vadd.f32 %v1032_v17, %v23_v5 }
 0x198   :  { %v1033_v8 = vcombine.low %v1019_v46, %v1020_v52 }
 0x199   :  { %v1075_v25 = vmul.f32 %v1064_v53, %v1043_v51 }
 0x19a   :  { %v1040_v21 = vrot.slane %v1033_v8, %v1278_v13 }
 0x19b   :  { %1107 = vst [vmem:[%s1914_s4 + $0x8] sm:$0xf] %v1075_v25 }
 0x19c   :  { %v1044_v58 = vadd.f32 %v1040_v21, %v24_v33 }
 0x19e   :  { %v1076_v7 = vmul.f32 %v1072_v55, %v1044_v58 }
 0x1a0   :  { %1108 = vst [vmem:[%s1914_s4 + $0xc] sm:$0xf] %v1076_v7 }
 0x209   :  { %v1090_v4 = vpop.xlane.xlu1 %1089 }
 0x20a   :  { %1092 = vst.msk [vmem:[%s1915_s5] sm:$0x3] %vm1091_vm9, %v1090_v4 }

</bundles_post_ra>
